<compile_context>
chip_gen: v7x
topology: tpu7x:2x2x1
jax: 0.10.0
libtpu: 0.0.40
codegen_flags: <defaults>
</compile_context>

<pallas_src>
import functools

import jax
import jax.numpy as jnp
from jax.experimental import pallas as pl
from jax.experimental.pallas import tpu as pltpu

TIME_WINDOW = 4
THRESH = 0.5
DECAY = 0.25
BN_EPS = 1e-5


def _round_up(x, m):
    return (x + m - 1) // m * m


# ----------------------- conv (+ fused BN stats) kernel ---------------------


def _conv_stats_kernel(a_ref, w_ref, y_ref, st_ref):
    # a_ref: (tm, kpad) bf16 patches; w_ref: (kpad, tn) bf16 weights (constant
    # index_map -> fetched once, VMEM-resident for the whole grid).
    y = jnp.dot(a_ref[...], w_ref[...], preferred_element_type=jnp.float32)
    y_ref[...] = y
    # Fused TDBN partial statistics for this row block (row 0 = sum,
    # row 1 = sum of squares); reduced over row blocks in plain JAX.
    s1 = jnp.sum(y, axis=0, keepdims=True)
    s2 = jnp.sum(y * y, axis=0, keepdims=True)
    pad = jnp.zeros((6, s1.shape[1]), jnp.float32)
    st_ref[0] = jnp.concatenate([s1, s2, pad], axis=0)


def conv_matmul_stats(a, w, *, tm, tn):
    """(M,Kp)bf16 @ (Kp,N)bf16 -> ((M,N)f32, (M//tm, 8, N)f32 partial stats)."""
    M, Kp = a.shape
    _, N = w.shape
    nbi, nbj = M // tm, N // tn
    cost = pl.CostEstimate(
        flops=2 * M * N * Kp,
        transcendentals=0,
        bytes_accessed=M * Kp * 2 + Kp * N * 2 + M * N * 4 + nbi * 8 * N * 4)
    return pl.pallas_call(
        _conv_stats_kernel,
        out_shape=(jax.ShapeDtypeStruct((M, N), jnp.float32),
                   jax.ShapeDtypeStruct((nbi, 8, N), jnp.float32)),
        grid=(nbi, nbj),
        in_specs=[
            pl.BlockSpec((tm, Kp), lambda i, j: (i, 0)),   # patches: once per i
            pl.BlockSpec((Kp, tn), lambda i, j: (0, j)),   # weights: resident
        ],
        out_specs=(pl.BlockSpec((tm, tn), lambda i, j: (i, j)),
                   pl.BlockSpec((1, 8, tn), lambda i, j: (i, 0, j))),
        compiler_params=pltpu.CompilerParams(
            dimension_semantics=("parallel", "parallel")),
        cost_estimate=cost,
    )(a, w)


# ------------------------------ LIF kernels ---------------------------------


def _lif_store(xi, o_ref):
    # mem[0] = x[0]; mem[i] = mem[i-1]*decay*(1-spike[i-1]) + x[i];
    # spike = (mem > thresh).  LIF math kept in f32; only the store narrows.
    mem = xi(0)
    spike = (mem > THRESH).astype(jnp.float32)
    o_ref[0:1] = spike.astype(o_ref.dtype)
    for i in range(1, TIME_WINDOW):
        mem = mem * (DECAY * (1.0 - spike)) + xi(i)
        spike = (mem > THRESH).astype(jnp.float32)
        o_ref[i:i + 1] = spike.astype(o_ref.dtype)


def _bn_lif_kernel(x_ref, sc_ref, of_ref, o_ref):
    sc, of = sc_ref[...], of_ref[...]
    _lif_store(lambda i: x_ref[i:i + 1] * sc + of, o_ref)


def _bn_add_lif_kernel(r_ref, s_ref, scr_ref, ofr_ref, scs_ref, ofs_ref, o_ref):
    scr, ofr = scr_ref[...], ofr_ref[...]
    scs, ofs = scs_ref[...], ofs_ref[...]
    _lif_store(
        lambda i: r_ref[i:i + 1] * scr + ofr + s_ref[i:i + 1] * scs + ofs, o_ref)


def _bn_idadd_lif_kernel(r_ref, s_ref, scr_ref, ofr_ref, o_ref):
    # Identity shortcut: raw x added, no dead scale=1/offset=0 multiplies.
    scr, ofr = scr_ref[...], ofr_ref[...]
    _lif_store(
        lambda i: r_ref[i:i + 1] * scr + ofr + s_ref[i:i + 1].astype(jnp.float32),
        o_ref)


def _lif_call(kernel, big_inputs, small_inputs, *, ts, tc, out_dtype):
    T, mb_pad, C = big_inputs[0].shape
    big = pl.BlockSpec((T, ts, tc), lambda i, j: (0, i, j))
    small = pl.BlockSpec((1, 1, tc), lambda i, j: (0, 0, j))
    return pl.pallas_call(
        kernel,
        out_shape=jax.ShapeDtypeStruct((T, mb_pad, C), out_dtype),
        grid=(mb_pad // ts, C // tc),
        in_specs=[big] * len(big_inputs) + [small] * len(small_inputs),
        out_specs=big,
        compiler_params=pltpu.CompilerParams(
            dimension_semantics=("parallel", "parallel")),
    )(*big_inputs, *small_inputs)


# ------------------------------- JAX glue -----------------------------------


def _im2col(x_nhwc, K, stride, pad):
    """x: (N, H, W, C) -> patches (N*Hout*Wout, K*K*C), tap-major, C fastest."""
    N, H, W, C = x_nhwc.shape
    xp = jnp.pad(x_nhwc, ((0, 0), (pad, pad), (pad, pad), (0, 0)))
    Hp, Wp = H + 2 * pad, W + 2 * pad
    Hout = (Hp - K) // stride + 1
    Wout = (Wp - K) // stride + 1
    cols = []
    for kh in range(K):
        for kw in range(K):
            cols.append(jax.lax.slice(
                xp,
                (0, kh, kw, 0),
                (N, kh + (Hout - 1) * stride + 1, kw + (Wout - 1) * stride + 1, C),
                (1, stride, stride, 1)))
    patches = jnp.stack(cols, axis=3)  # (N, Hout, Wout, K*K, C)
    return patches.reshape(N * Hout * Wout, K * K * C), Hout, Wout


def snn_conv2d(x_tbhwc, w_oikk, K, stride, pad, *, mb_pad, c_pad, tm, tn):
    """Snn_Conv2d (bias=False) for all timesteps as one Pallas matmul.

    Returns (y, stats_partial, Hout, Wout):
      y: (T*mb_pad, c_pad) f32, rows ordered (T, B, Hout, Wout), zero padded.
      stats_partial: (num_row_blocks, 8, c_pad); rows 0/1 = per-channel
      sum / sum-of-squares of that row block.
    """
    T, B, H, W, Cin = x_tbhwc.shape
    Cout = w_oikk.shape[0]
    # Cast BEFORE im2col: the K^2-expanded patch temp lives in HBM in bf16.
    xb = x_tbhwc.astype(jnp.bfloat16)
    patches, Hout, Wout = _im2col(xb.reshape(T * B, H, W, Cin), K, stride, pad)
    mb = B * Hout * Wout
    kdim = K * K * Cin
    kpad = _round_up(kdim, 128)           # no extra K padding beyond 128

    p = patches.reshape(T, mb, kdim)
    p = jnp.pad(p, ((0, 0), (0, mb_pad - mb), (0, kpad - kdim)))
    p = p.reshape(T * mb_pad, kpad)

    # (Cout, Cin, K, K) -> (K, K, Cin, Cout) -> (K*K*Cin, Cout), im2col order.
    w_mat = jnp.transpose(w_oikk, (2, 3, 1, 0)).reshape(kdim, Cout)
    w_mat = jnp.pad(w_mat, ((0, kpad - kdim), (0, c_pad - Cout))).astype(jnp.bfloat16)

    y, st = conv_matmul_stats(p, w_mat, tm=tm, tn=tn)
    return y, st, Hout, Wout


def bn_fold(st_partial, gamma, beta, n_valid, c_pad):
    """Fold training-mode TDBN (batch stats, biased var) into scale/offset."""
    Cout = gamma.shape[0]
    g = jnp.pad(gamma, (0, c_pad - Cout))
    b = jnp.pad(beta, (0, c_pad - Cout))
    s = jnp.sum(st_partial[:, 0, :], axis=0)
    s2 = jnp.sum(st_partial[:, 1, :], axis=0)
    mean = s / n_valid
    var = jnp.maximum(s2 / n_valid - mean * mean, 0.0)
    scale = g * jax.lax.rsqrt(var + BN_EPS)
    offset = b - mean * scale
    return scale.reshape(1, 1, c_pad), offset.reshape(1, 1, c_pad)


def basic_block_18(x_tbchw, params, stride):
    T, B, Cin, H, W = x_tbchw.shape
    assert T == TIME_WINDOW
    Cout = params["w1"].shape[0]
    x = jnp.transpose(x_tbchw, (0, 1, 3, 4, 2))  # (T, B, H, W, Cin)

    # All convs in the block share the same output spatial dims.
    H1 = (H + 2 - 3) // stride + 1
    W1 = (W + 2 - 3) // stride + 1
    mb = B * H1 * W1
    n_valid = T * mb
    c_pad = _round_up(Cout, 128)
    row_tile = min(512, _round_up(mb, 128))
    mb_pad = _round_up(mb, row_tile)
    # Lane-dense channel tile; c_pad <= 512 collapses the channel grid axis so
    # the im2col patch matrix is streamed from HBM exactly once per conv.
    if c_pad <= 512:
        tn = c_pad
    elif c_pad % 512 == 0:
        tn = 512
    elif c_pad % 256 == 0:
        tn = 256
    else:
        tn = 128
    ts = row_tile if row_tile <= 256 else row_tile // 2   # keeps VMEM well <32MiB
    tc = tn

    conv = functools.partial(snn_conv2d, mb_pad=mb_pad, c_pad=c_pad,
                             tm=row_tile, tn=tn)
    lif = functools.partial(_lif_call, ts=ts, tc=tc)

    # residual: conv1 -> fused TDBN stats -> LIF with folded BN (bf16 spikes)
    y1, st1, _, _ = conv(x, params["w1"], 3, stride, 1)
    sc1, of1 = bn_fold(st1, params["g1"], params["b1"], n_valid, c_pad)
    spk1 = lif(_bn_lif_kernel, (y1.reshape(T, mb_pad, c_pad),), (sc1, of1),
               out_dtype=jnp.bfloat16)

    # conv2 -> fused TDBN stats
    spk_img = spk1[:, :mb, :Cout].reshape(T, B, H1, W1, Cout)
    y2, st2, _, _ = conv(spk_img, params["w2"], 3, 1, 1)
    sc2, of2 = bn_fold(st2, params["g2"], params["b2"], n_valid, c_pad)
    y2 = y2.reshape(T, mb_pad, c_pad)

    if stride != 1 or Cin != Cout:
        # conv1x1 shortcut -> fused TDBN stats; then BN + BN + add + LIF
        ys, sts, _, _ = conv(x, params["ws"], 1, stride, 0)
        scs, ofs = bn_fold(sts, params["gs"], params["bs"], n_valid, c_pad)
        out = lif(_bn_add_lif_kernel,
                  (y2, ys.reshape(T, mb_pad, c_pad)),
                  (sc2, of2, scs, ofs), out_dtype=jnp.float32)
    else:
        # identity shortcut: add raw x; pad only when shapes actually demand it
        xs = x.reshape(T, mb, Cin)
        if mb_pad != mb or c_pad != Cin:
            xs = jnp.pad(xs, ((0, 0), (0, mb_pad - mb), (0, c_pad - Cin)))
        out = lif(_bn_idadd_lif_kernel, (y2, xs), (sc2, of2),
                  out_dtype=jnp.float32)

    out = out[:, :mb, :Cout].reshape(T, B, H1, W1, Cout)
    return jnp.transpose(out, (0, 1, 4, 2, 3))  # (T, B, Cout, H1, W1)


def init_params(key, in_channels, out_channels):
    k1, k2, k3 = jax.random.split(key, 3)
    ones = jnp.full((out_channels,), THRESH, jnp.float32)   # BatchNorm3d1: weight=thresh
    zeros = jnp.zeros((out_channels,), jnp.float32)
    return {
        "w1": jax.random.normal(k1, (out_channels, in_channels, 3, 3), jnp.float32) * 0.2,
        "g1": ones, "b1": zeros,
        "w2": jax.random.normal(k2, (out_channels, out_channels, 3, 3), jnp.float32) * 0.2,
        "g2": ones, "b2": zeros,
        "ws": jax.random.normal(k3, (out_channels, in_channels, 1, 1), jnp.float32) * 0.2,
        "gs": ones, "bs": zeros,
    }


if __name__ == "__main__":
    key = jax.random.PRNGKey(0)
    kx, kp = jax.random.split(key)

    # Main example: T=4 (fixed by module), B=2, Cin=4, H=W=16, Cout=8, stride=2
    # (exercises the conv1x1 + BN shortcut path).
    T, B, Cin, H, W = TIME_WINDOW, 2, 4, 16, 16
    Cout, stride = 8, 2
    x = jax.random.normal(kx, (T, B, Cin, H, W), jnp.float32)
    params = init_params(kp, Cin, Cout)
    fwd = jax.jit(functools.partial(basic_block_18, stride=stride))
    out = jax.block_until_ready(fwd(x, params))
    assert out.shape == (T, B, Cout, H // stride, W // stride), out.shape
    assert out.dtype == jnp.float32

    # Also exercise the identity-shortcut path (stride=1, Cin == Cout).
    ki, kpi = jax.random.split(kp)
    x2 = jax.random.normal(ki, (T, B, Cout, 8, 8), jnp.float32)
    params2 = init_params(kpi, Cout, Cout)
    fwd2 = jax.jit(functools.partial(basic_block_18, stride=1))
    out2 = jax.block_until_ready(fwd2(x2, params2))
    assert out2.shape == (T, B, Cout, 8, 8), out2.shape

    print("KERNEL_OK")
</pallas_src>

<mosaic_0001>
module attributes {stable_mosaic.version = 11 : i64} {
  func.func @_conv_stats_kernel(%arg0: i32, %arg1: i32, %arg2: memref<128x128xbf16, #tpu.memory_space<vmem>>, %arg3: memref<128x128xbf16, #tpu.memory_space<vmem>>, %arg4: memref<128x128xf32, #tpu.memory_space<vmem>>, %arg5: memref<1x8x128xf32, #tpu.memory_space<vmem>>) attributes {dimension_semantics = [#tpu.dimension_semantics<parallel>, #tpu.dimension_semantics<parallel>], iteration_bounds = array<i64: 4, 1>, scalar_prefetch = 0 : i64, scratch_operands = 0 : i64, tpu.core_type = #tpu.core_type<tc>, window_params = [{transform_indices = @transform_0, window_bounds = array<i64: 128, 128>}, {transform_indices = @transform_1, window_bounds = array<i64: 128, 128>}, {transform_indices = @transform_2, window_bounds = array<i64: 128, 128>}, {transform_indices = @transform_3, window_bounds = array<i64: 1, 8, 128>}]} {
    %c0 = arith.constant 0 : index
    %c0_0 = arith.constant 0 : index
    %0 = vector.load %arg2[%c0, %c0_0] : memref<128x128xbf16, #tpu.memory_space<vmem>>, vector<128x128xbf16>
    %c0_1 = arith.constant 0 : index
    %c0_2 = arith.constant 0 : index
    %1 = vector.load %arg3[%c0_1, %c0_2] : memref<128x128xbf16, #tpu.memory_space<vmem>>, vector<128x128xbf16>
    %cst = arith.constant dense<0.000000e+00> : vector<128x128xf32>
    %2 = tpu.matmul %0, %1, %cst {dimension_numbers = #tpu.dot_dimension_numbers<[1], [0], [0], [1], [0, 0, 1, 1], [], []>} : vector<128x128xbf16>, vector<128x128xbf16>, vector<128x128xf32> -> vector<128x128xf32>
    %c0_3 = arith.constant 0 : index
    %c0_4 = arith.constant 0 : index
    %3 = vector.load %arg4[%c0_3, %c0_4] : memref<128x128xf32, #tpu.memory_space<vmem>>, vector<128x128xf32>
    tpu.vector_store %arg4[%c0_3, %c0_4], %2 {strides = array<i32>} : memref<128x128xf32, #tpu.memory_space<vmem>>, vector<128x128xf32>,
    %cst_5 = arith.constant dense<0.000000e+00> : vector<128xf32>
    %4 = vector.multi_reduction <add>, %2, %cst_5 [0] : vector<128x128xf32> to vector<128xf32>
    %5 = vector.shape_cast %4 : vector<128xf32> to vector<1x128xf32>
    %6 = arith.mulf %2, %2 : vector<128x128xf32>
    %cst_6 = arith.constant dense<0.000000e+00> : vector<128xf32>
    %7 = vector.multi_reduction <add>, %6, %cst_6 [0] : vector<128x128xf32> to vector<128xf32>
    %8 = vector.shape_cast %7 : vector<128xf32> to vector<1x128xf32>
    %cst_7 = arith.constant 0.000000e+00 : f32
    %9 = vector.broadcast %cst_7 : f32 to vector<6x128xf32>
    %10 = tpu.concatenate %5, %8, %9 in 0 : vector<1x128xf32>, vector<1x128xf32>, vector<6x128xf32> -> vector<8x128xf32>
    %c0_8 = arith.constant 0 : index
    %c0_9 = arith.constant 0 : index
    %c0_10 = arith.constant 0 : index
    %11 = vector.load %arg5[%c0_8, %c0_9, %c0_10] : memref<1x8x128xf32, #tpu.memory_space<vmem>>, vector<1x8x128xf32>
    %12 = vector.shape_cast %11 : vector<1x8x128xf32> to vector<8x128xf32>
    %13 = vector.shape_cast %10 : vector<8x128xf32> to vector<1x8x128xf32>
    tpu.vector_store %arg5[%c0_8, %c0_9, %c0_10], %13 {strides = array<i32>} : memref<1x8x128xf32, #tpu.memory_space<vmem>>, vector<1x8x128xf32>,
    return
  }
  func.func @transform_0(%arg0: i32, %arg1: i32) -> (i32, i32) {
    %c0_i32 = arith.constant 0 : i32
    %c0_i32_0 = arith.constant 0 : i32
    return %arg0, %c0_i32 : i32, i32
  }
  func.func @transform_1(%arg0: i32, %arg1: i32) -> (i32, i32) {
    %c0_i32 = arith.constant 0 : i32
    %c0_i32_0 = arith.constant 0 : i32
    return %c0_i32, %arg1 : i32, i32
  }
  func.func @transform_2(%arg0: i32, %arg1: i32) -> (i32, i32) {
    %c0_i32 = arith.constant 0 : i32
    return %arg0, %arg1 : i32, i32
  }
  func.func @transform_3(%arg0: i32, %arg1: i32) -> (i32, i32, i32) {
    %c0_i32 = arith.constant 0 : i32
    %c0_i32_0 = arith.constant 0 : i32
    return %arg0, %c0_i32, %arg1 : i32, i32, i32
  }
}

module attributes {stable_mosaic.version = 11 : i64} {
  func.func @_bn_lif_kernel(%arg0: i32, %arg1: i32, %arg2: memref<4x128x128xf32, #tpu.memory_space<vmem>>, %arg3: memref<1x1x128xf32, #tpu.memory_space<vmem>>, %arg4: memref<1x1x128xf32, #tpu.memory_space<vmem>>, %arg5: memref<4x128x128xbf16, #tpu.memory_space<vmem>>) attributes {dimension_semantics = [#tpu.dimension_semantics<parallel>, #tpu.dimension_semantics<parallel>], iteration_bounds = array<i64: 1, 1>, scalar_prefetch = 0 : i64, scratch_operands = 0 : i64, tpu.core_type = #tpu.core_type<tc>, window_params = [{transform_indices = @transform_0, window_bounds = array<i64: 4, 128, 128>}, {transform_indices = @transform_1, window_bounds = array<i64: 1, 1, 128>}, {transform_indices = @transform_2, window_bounds = array<i64: 1, 1, 128>}, {transform_indices = @transform_3, window_bounds = array<i64: 4, 128, 128>}]} {
    %c0 = arith.constant 0 : index
    %c0_0 = arith.constant 0 : index
    %c0_1 = arith.constant 0 : index
    %0 = vector.load %arg3[%c0, %c0_0, %c0_1] : memref<1x1x128xf32, #tpu.memory_space<vmem>>, vector<1x1x128xf32>
    %c0_2 = arith.constant 0 : index
    %c0_3 = arith.constant 0 : index
    %c0_4 = arith.constant 0 : index
    %1 = vector.load %arg4[%c0_2, %c0_3, %c0_4] : memref<1x1x128xf32, #tpu.memory_space<vmem>>, vector<1x1x128xf32>
    %c0_5 = arith.constant 0 : index
    %c0_6 = arith.constant 0 : index
    %c0_7 = arith.constant 0 : index
    %2 = vector.load %arg2[%c0_5, %c0_6, %c0_7] : memref<4x128x128xf32, #tpu.memory_space<vmem>>, vector<1x128x128xf32>
    %3 = vector.broadcast %0 : vector<1x1x128xf32> to vector<1x128x128xf32>
    %4 = arith.mulf %2, %3 : vector<1x128x128xf32>
    %5 = vector.broadcast %1 : vector<1x1x128xf32> to vector<1x128x128xf32>
    %6 = arith.addf %4, %5 : vector<1x128x128xf32>
    %cst = arith.constant 5.000000e-01 : f32
    %7 = vector.broadcast %cst : f32 to vector<1x128x128xf32>
    %8 = arith.cmpf ogt, %6, %7 : vector<1x128x128xf32>
    %9 = arith.extui %8 : vector<1x128x128xi1> to vector<1x128x128xi32>
    %10 = arith.sitofp %9 : vector<1x128x128xi32> to vector<1x128x128xf32>
    %11 = arith.truncf %10 : vector<1x128x128xf32> to vector<1x128x128xbf16>
    %c0_8 = arith.constant 0 : index
    %c0_9 = arith.constant 0 : index
    %c0_10 = arith.constant 0 : index
    %12 = vector.load %arg5[%c0_8, %c0_9, %c0_10] : memref<4x128x128xbf16, #tpu.memory_space<vmem>>, vector<1x128x128xbf16>
    tpu.vector_store %arg5[%c0_8, %c0_9, %c0_10], %11 {strides = array<i32>} : memref<4x128x128xbf16, #tpu.memory_space<vmem>>, vector<1x128x128xbf16>,
    %cst_11 = arith.constant 1.000000e+00 : f32
    %13 = vector.broadcast %cst_11 : f32 to vector<1x128x128xf32>
    %14 = arith.subf %13, %10 : vector<1x128x128xf32>
    %cst_12 = arith.constant 2.500000e-01 : f32
    %15 = vector.broadcast %cst_12 : f32 to vector<1x128x128xf32>
    %16 = arith.mulf %15, %14 : vector<1x128x128xf32>
    %17 = arith.mulf %6, %16 : vector<1x128x128xf32>
    %c1 = arith.constant 1 : index
    %c0_13 = arith.constant 0 : index
    %c0_14 = arith.constant 0 : index
    %18 = vector.load %arg2[%c1, %c0_13, %c0_14] : memref<4x128x128xf32, #tpu.memory_space<vmem>>, vector<1x128x128xf32>
    %19 = vector.broadcast %0 : vector<1x1x128xf32> to vector<1x128x128xf32>
    %20 = arith.mulf %18, %19 : vector<1x128x128xf32>
    %21 = vector.broadcast %1 : vector<1x1x128xf32> to vector<1x128x128xf32>
    %22 = arith.addf %20, %21 : vector<1x128x128xf32>
    %23 = arith.addf %17, %22 : vector<1x128x128xf32>
    %cst_15 = arith.constant 5.000000e-01 : f32
    %24 = vector.broadcast %cst_15 : f32 to vector<1x128x128xf32>
    %25 = arith.cmpf ogt, %23, %24 : vector<1x128x128xf32>
    %26 = arith.extui %25 : vector<1x128x128xi1> to vector<1x128x128xi32>
    %27 = arith.sitofp %26 : vector<1x128x128xi32> to vector<1x128x128xf32>
    %28 = arith.truncf %27 : vector<1x128x128xf32> to vector<1x128x128xbf16>
    %c1_16 = arith.constant 1 : index
    %c0_17 = arith.constant 0 : index
    %c0_18 = arith.constant 0 : index
    %29 = vector.load %arg5[%c1_16, %c0_17, %c0_18] : memref<4x128x128xbf16, #tpu.memory_space<vmem>>, vector<1x128x128xbf16>
    tpu.vector_store %arg5[%c1_16, %c0_17, %c0_18], %28 {strides = array<i32>} : memref<4x128x128xbf16, #tpu.memory_space<vmem>>, vector<1x128x128xbf16>,
    %cst_19 = arith.constant 1.000000e+00 : f32
    %30 = vector.broadcast %cst_19 : f32 to vector<1x128x128xf32>
    %31 = arith.subf %30, %27 : vector<1x128x128xf32>
    %cst_20 = arith.constant 2.500000e-01 : f32
    %32 = vector.broadcast %cst_20 : f32 to vector<1x128x128xf32>
    %33 = arith.mulf %32, %31 : vector<1x128x128xf32>
    %34 = arith.mulf %23, %33 : vector<1x128x128xf32>
    %c2 = arith.constant 2 : index
    %c0_21 = arith.constant 0 : index
    %c0_22 = arith.constant 0 : index
    %35 = vector.load %arg2[%c2, %c0_21, %c0_22] : memref<4x128x128xf32, #tpu.memory_space<vmem>>, vector<1x128x128xf32>
    %36 = vector.broadcast %0 : vector<1x1x128xf32> to vector<1x128x128xf32>
    %37 = arith.mulf %35, %36 : vector<1x128x128xf32>
    %38 = vector.broadcast %1 : vector<1x1x128xf32> to vector<1x128x128xf32>
    %39 = arith.addf %37, %38 : vector<1x128x128xf32>
    %40 = arith.addf %34, %39 : vector<1x128x128xf32>
    %cst_23 = arith.constant 5.000000e-01 : f32
    %41 = vector.broadcast %cst_23 : f32 to vector<1x128x128xf32>
    %42 = arith.cmpf ogt, %40, %41 : vector<1x128x128xf32>
    %43 = arith.extui %42 : vector<1x128x128xi1> to vector<1x128x128xi32>
    %44 = arith.sitofp %43 : vector<1x128x128xi32> to vector<1x128x128xf32>
    %45 = arith.truncf %44 : vector<1x128x128xf32> to vector<1x128x128xbf16>
    %c2_24 = arith.constant 2 : index
    %c0_25 = arith.constant 0 : index
    %c0_26 = arith.constant 0 : index
    %46 = vector.load %arg5[%c2_24, %c0_25, %c0_26] : memref<4x128x128xbf16, #tpu.memory_space<vmem>>, vector<1x128x128xbf16>
    tpu.vector_store %arg5[%c2_24, %c0_25, %c0_26], %45 {strides = array<i32>} : memref<4x128x128xbf16, #tpu.memory_space<vmem>>, vector<1x128x128xbf16>,
    %cst_27 = arith.constant 1.000000e+00 : f32
    %47 = vector.broadcast %cst_27 : f32 to vector<1x128x128xf32>
    %48 = arith.subf %47, %44 : vector<1x128x128xf32>
    %cst_28 = arith.constant 2.500000e-01 : f32
    %49 = vector.broadcast %cst_28 : f32 to vector<1x128x128xf32>
    %50 = arith.mulf %49, %48 : vector<1x128x128xf32>
    %51 = arith.mulf %40, %50 : vector<1x128x128xf32>
    %c3 = arith.constant 3 : index
    %c0_29 = arith.constant 0 : index
    %c0_30 = arith.constant 0 : index
    %52 = vector.load %arg2[%c3, %c0_29, %c0_30] : memref<4x128x128xf32, #tpu.memory_space<vmem>>, vector<1x128x128xf32>
    %53 = vector.broadcast %0 : vector<1x1x128xf32> to vector<1x128x128xf32>
    %54 = arith.mulf %52, %53 : vector<1x128x128xf32>
    %55 = vector.broadcast %1 : vector<1x1x128xf32> to vector<1x128x128xf32>
    %56 = arith.addf %54, %55 : vector<1x128x128xf32>
    %57 = arith.addf %51, %56 : vector<1x128x128xf32>
    %cst_31 = arith.constant 5.000000e-01 : f32
    %58 = vector.broadcast %cst_31 : f32 to vector<1x128x128xf32>
    %59 = arith.cmpf ogt, %57, %58 : vector<1x128x128xf32>
    %60 = arith.extui %59 : vector<1x128x128xi1> to vector<1x128x128xi32>
    %61 = arith.sitofp %60 : vector<1x128x128xi32> to vector<1x128x128xf32>
    %62 = arith.truncf %61 : vector<1x128x128xf32> to vector<1x128x128xbf16>
    %c3_32 = arith.constant 3 : index
    %c0_33 = arith.constant 0 : index
    %c0_34 = arith.constant 0 : index
    %63 = vector.load %arg5[%c3_32, %c0_33, %c0_34] : memref<4x128x128xbf16, #tpu.memory_space<vmem>>, vector<1x128x128xbf16>
    tpu.vector_store %arg5[%c3_32, %c0_33, %c0_34], %62 {strides = array<i32>} : memref<4x128x128xbf16, #tpu.memory_space<vmem>>, vector<1x128x128xbf16>,
    return
  }
  func.func @transform_0(%arg0: i32, %arg1: i32) -> (i32, i32, i32) {
    %c0_i32 = arith.constant 0 : i32
    %c0_i32_0 = arith.constant 0 : i32
    return %c0_i32, %arg0, %arg1 : i32, i32, i32
  }
  func.func @transform_1(%arg0: i32, %arg1: i32) -> (i32, i32, i32) {
    %c0_i32 = arith.constant 0 : i32
    %c0_i32_0 = arith.constant 0 : i32
    %c0_i32_1 = arith.constant 0 : i32
    return %c0_i32, %c0_i32_0, %arg1 : i32, i32, i32
  }
  func.func @transform_2(%arg0: i32, %arg1: i32) -> (i32, i32, i32) {
    %c0_i32 = arith.constant 0 : i32
    %c0_i32_0 = arith.constant 0 : i32
    %c0_i32_1 = arith.constant 0 : i32
    return %c0_i32, %c0_i32_0, %arg1 : i32, i32, i32
  }
  func.func @transform_3(%arg0: i32, %arg1: i32) -> (i32, i32, i32) {
    %c0_i32 = arith.constant 0 : i32
    %c0_i32_0 = arith.constant 0 : i32
    return %c0_i32, %arg0, %arg1 : i32, i32, i32
  }
}

module attributes {stable_mosaic.version = 11 : i64} {
  func.func @_bn_add_lif_kernel(%arg0: i32, %arg1: i32, %arg2: memref<4x128x128xf32, #tpu.memory_space<vmem>>, %arg3: memref<4x128x128xf32, #tpu.memory_space<vmem>>, %arg4: memref<1x1x128xf32, #tpu.memory_space<vmem>>, %arg5: memref<1x1x128xf32, #tpu.memory_space<vmem>>, %arg6: memref<1x1x128xf32, #tpu.memory_space<vmem>>, %arg7: memref<1x1x128xf32, #tpu.memory_space<vmem>>, %arg8: memref<4x128x128xf32, #tpu.memory_space<vmem>>) attributes {dimension_semantics = [#tpu.dimension_semantics<parallel>, #tpu.dimension_semantics<parallel>], iteration_bounds = array<i64: 1, 1>, scalar_prefetch = 0 : i64, scratch_operands = 0 : i64, tpu.core_type = #tpu.core_type<tc>, window_params = [{transform_indices = @transform_0, window_bounds = array<i64: 4, 128, 128>}, {transform_indices = @transform_1, window_bounds = array<i64: 4, 128, 128>}, {transform_indices = @transform_2, window_bounds = array<i64: 1, 1, 128>}, {transform_indices = @transform_3, window_bounds = array<i64: 1, 1, 128>}, {transform_indices = @transform_4, window_bounds = array<i64: 1, 1, 128>}, {transform_indices = @transform_5, window_bounds = array<i64: 1, 1, 128>}, {transform_indices = @transform_6, window_bounds = array<i64: 4, 128, 128>}]} {
    %c0 = arith.constant 0 : index
    %c0_0 = arith.constant 0 : index
    %c0_1 = arith.constant 0 : index
    %0 = vector.load %arg4[%c0, %c0_0, %c0_1] : memref<1x1x128xf32, #tpu.memory_space<vmem>>, vector<1x1x128xf32>
    %c0_2 = arith.constant 0 : index
    %c0_3 = arith.constant 0 : index
    %c0_4 = arith.constant 0 : index
    %1 = vector.load %arg5[%c0_2, %c0_3, %c0_4] : memref<1x1x128xf32, #tpu.memory_space<vmem>>, vector<1x1x128xf32>
    %c0_5 = arith.constant 0 : index
    %c0_6 = arith.constant 0 : index
    %c0_7 = arith.constant 0 : index
    %2 = vector.load %arg6[%c0_5, %c0_6, %c0_7] : memref<1x1x128xf32, #tpu.memory_space<vmem>>, vector<1x1x128xf32>
    %c0_8 = arith.constant 0 : index
    %c0_9 = arith.constant 0 : index
    %c0_10 = arith.constant 0 : index
    %3 = vector.load %arg7[%c0_8, %c0_9, %c0_10] : memref<1x1x128xf32, #tpu.memory_space<vmem>>, vector<1x1x128xf32>
    %c0_11 = arith.constant 0 : index
    %c0_12 = arith.constant 0 : index
    %c0_13 = arith.constant 0 : index
    %4 = vector.load %arg2[%c0_11, %c0_12, %c0_13] : memref<4x128x128xf32, #tpu.memory_space<vmem>>, vector<1x128x128xf32>
    %5 = vector.broadcast %0 : vector<1x1x128xf32> to vector<1x128x128xf32>
    %6 = arith.mulf %4, %5 : vector<1x128x128xf32>
    %7 = vector.broadcast %1 : vector<1x1x128xf32> to vector<1x128x128xf32>
    %8 = arith.addf %6, %7 : vector<1x128x128xf32>
    %c0_14 = arith.constant 0 : index
    %c0_15 = arith.constant 0 : index
    %c0_16 = arith.constant 0 : index
    %9 = vector.load %arg3[%c0_14, %c0_15, %c0_16] : memref<4x128x128xf32, #tpu.memory_space<vmem>>, vector<1x128x128xf32>
    %10 = vector.broadcast %2 : vector<1x1x128xf32> to vector<1x128x128xf32>
    %11 = arith.mulf %9, %10 : vector<1x128x128xf32>
    %12 = arith.addf %8, %11 : vector<1x128x128xf32>
    %13 = vector.broadcast %3 : vector<1x1x128xf32> to vector<1x128x128xf32>
    %14 = arith.addf %12, %13 : vector<1x128x128xf32>
    %cst = arith.constant 5.000000e-01 : f32
    %15 = vector.broadcast %cst : f32 to vector<1x128x128xf32>
    %16 = arith.cmpf ogt, %14, %15 : vector<1x128x128xf32>
    %17 = arith.extui %16 : vector<1x128x128xi1> to vector<1x128x128xi32>
    %18 = arith.sitofp %17 : vector<1x128x128xi32> to vector<1x128x128xf32>
    %c0_17 = arith.constant 0 : index
    %c0_18 = arith.constant 0 : index
    %c0_19 = arith.constant 0 : index
    %19 = vector.load %arg8[%c0_17, %c0_18, %c0_19] : memref<4x128x128xf32, #tpu.memory_space<vmem>>, vector<1x128x128xf32>
    tpu.vector_store %arg8[%c0_17, %c0_18, %c0_19], %18 {strides = array<i32>} : memref<4x128x128xf32, #tpu.memory_space<vmem>>, vector<1x128x128xf32>,
    %cst_20 = arith.constant 1.000000e+00 : f32
    %20 = vector.broadcast %cst_20 : f32 to vector<1x128x128xf32>
    %21 = arith.subf %20, %18 : vector<1x128x128xf32>
    %cst_21 = arith.constant 2.500000e-01 : f32
    %22 = vector.broadcast %cst_21 : f32 to vector<1x128x128xf32>
    %23 = arith.mulf %22, %21 : vector<1x128x128xf32>
    %24 = arith.mulf %14, %23 : vector<1x128x128xf32>
    %c1 = arith.constant 1 : index
    %c0_22 = arith.constant 0 : index
    %c0_23 = arith.constant 0 : index
    %25 = vector.load %arg2[%c1, %c0_22, %c0_23] : memref<4x128x128xf32, #tpu.memory_space<vmem>>, vector<1x128x128xf32>
    %26 = vector.broadcast %0 : vector<1x1x128xf32> to vector<1x128x128xf32>
    %27 = arith.mulf %25, %26 : vector<1x128x128xf32>
    %28 = vector.broadcast %1 : vector<1x1x128xf32> to vector<1x128x128xf32>
    %29 = arith.addf %27, %28 : vector<1x128x128xf32>
    %c1_24 = arith.constant 1 : index
    %c0_25 = arith.constant 0 : index
    %c0_26 = arith.constant 0 : index
    %30 = vector.load %arg3[%c1_24, %c0_25, %c0_26] : memref<4x128x128xf32, #tpu.memory_space<vmem>>, vector<1x128x128xf32>
    %31 = vector.broadcast %2 : vector<1x1x128xf32> to vector<1x128x128xf32>
    %32 = arith.mulf %30, %31 : vector<1x128x128xf32>
    %33 = arith.addf %29, %32 : vector<1x128x128xf32>
    %34 = vector.broadcast %3 : vector<1x1x128xf32> to vector<1x128x128xf32>
    %35 = arith.addf %33, %34 : vector<1x128x128xf32>
    %36 = arith.addf %24, %35 : vector<1x128x128xf32>
    %cst_27 = arith.constant 5.000000e-01 : f32
    %37 = vector.broadcast %cst_27 : f32 to vector<1x128x128xf32>
    %38 = arith.cmpf ogt, %36, %37 : vector<1x128x128xf32>
    %39 = arith.extui %38 : vector<1x128x128xi1> to vector<1x128x128xi32>
    %40 = arith.sitofp %39 : vector<1x128x128xi32> to vector<1x128x128xf32>
    %c1_28 = arith.constant 1 : index
    %c0_29 = arith.constant 0 : index
    %c0_30 = arith.constant 0 : index
    %41 = vector.load %arg8[%c1_28, %c0_29, %c0_30] : memref<4x128x128xf32, #tpu.memory_space<vmem>>, vector<1x128x128xf32>
    tpu.vector_store %arg8[%c1_28, %c0_29, %c0_30], %40 {strides = array<i32>} : memref<4x128x128xf32, #tpu.memory_space<vmem>>, vector<1x128x128xf32>,
    %cst_31 = arith.constant 1.000000e+00 : f32
    %42 = vector.broadcast %cst_31 : f32 to vector<1x128x128xf32>
    %43 = arith.subf %42, %40 : vector<1x128x128xf32>
    %cst_32 = arith.constant 2.500000e-01 : f32
    %44 = vector.broadcast %cst_32 : f32 to vector<1x128x128xf32>
    %45 = arith.mulf %44, %43 : vector<1x128x128xf32>
    %46 = arith.mulf %36, %45 : vector<1x128x128xf32>
    %c2 = arith.constant 2 : index
    %c0_33 = arith.constant 0 : index
    %c0_34 = arith.constant 0 : index
    %47 = vector.load %arg2[%c2, %c0_33, %c0_34] : memref<4x128x128xf32, #tpu.memory_space<vmem>>, vector<1x128x128xf32>
    %48 = vector.broadcast %0 : vector<1x1x128xf32> to vector<1x128x128xf32>
    %49 = arith.mulf %47, %48 : vector<1x128x128xf32>
    %50 = vector.broadcast %1 : vector<1x1x128xf32> to vector<1x128x128xf32>
    %51 = arith.addf %49, %50 : vector<1x128x128xf32>
    %c2_35 = arith.constant 2 : index
    %c0_36 = arith.constant 0 : index
    %c0_37 = arith.constant 0 : index
    %52 = vector.load %arg3[%c2_35, %c0_36, %c0_37] : memref<4x128x128xf32, #tpu.memory_space<vmem>>, vector<1x128x128xf32>
    %53 = vector.broadcast %2 : vector<1x1x128xf32> to vector<1x128x128xf32>
    %54 = arith.mulf %52, %53 : vector<1x128x128xf32>
    %55 = arith.addf %51, %54 : vector<1x128x128xf32>
    %56 = vector.broadcast %3 : vector<1x1x128xf32> to vector<1x128x128xf32>
    %57 = arith.addf %55, %56 : vector<1x128x128xf32>
    %58 = arith.addf %46, %57 : vector<1x128x128xf32>
    %cst_38 = arith.constant 5.000000e-01 : f32
    %59 = vector.broadcast %cst_38 : f32 to vector<1x128x128xf32>
    %60 = arith.cmpf ogt, %58, %59 : vector<1x128x128xf32>
    %61 = arith.extui %60 : vector<1x128x128xi1> to vector<1x128x128xi32>
    %62 = arith.sitofp %61 : vector<1x128x128xi32> to vector<1x128x128xf32>
    %c2_39 = arith.constant 2 : index
    %c0_40 = arith.constant 0 : index
    %c0_41 = arith.constant 0 : index
    %63 = vector.load %arg8[%c2_39, %c0_40, %c0_41] : memref<4x128x128xf32, #tpu.memory_space<vmem>>, vector<1x128x128xf32>
    tpu.vector_store %arg8[%c2_39, %c0_40, %c0_41], %62 {strides = array<i32>} : memref<4x128x128xf32, #tpu.memory_space<vmem>>, vector<1x128x128xf32>,
    %cst_42 = arith.constant 1.000000e+00 : f32
    %64 = vector.broadcast %cst_42 : f32 to vector<1x128x128xf32>
    %65 = arith.subf %64, %62 : vector<1x128x128xf32>
    %cst_43 = arith.constant 2.500000e-01 : f32
    %66 = vector.broadcast %cst_43 : f32 to vector<1x128x128xf32>
    %67 = arith.mulf %66, %65 : vector<1x128x128xf32>
    %68 = arith.mulf %58, %67 : vector<1x128x128xf32>
    %c3 = arith.constant 3 : index
    %c0_44 = arith.constant 0 : index
    %c0_45 = arith.constant 0 : index
    %69 = vector.load %arg2[%c3, %c0_44, %c0_45] : memref<4x128x128xf32, #tpu.memory_space<vmem>>, vector<1x128x128xf32>
    %70 = vector.broadcast %0 : vector<1x1x128xf32> to vector<1x128x128xf32>
    %71 = arith.mulf %69, %70 : vector<1x128x128xf32>
    %72 = vector.broadcast %1 : vector<1x1x128xf32> to vector<1x128x128xf32>
    %73 = arith.addf %71, %72 : vector<1x128x128xf32>
    %c3_46 = arith.constant 3 : index
    %c0_47 = arith.constant 0 : index
    %c0_48 = arith.constant 0 : index
    %74 = vector.load %arg3[%c3_46, %c0_47, %c0_48] : memref<4x128x128xf32, #tpu.memory_space<vmem>>, vector<1x128x128xf32>
    %75 = vector.broadcast %2 : vector<1x1x128xf32> to vector<1x128x128xf32>
    %76 = arith.mulf %74, %75 : vector<1x128x128xf32>
    %77 = arith.addf %73, %76 : vector<1x128x128xf32>
    %78 = vector.broadcast %3 : vector<1x1x128xf32> to vector<1x128x128xf32>
    %79 = arith.addf %77, %78 : vector<1x128x128xf32>
    %80 = arith.addf %68, %79 : vector<1x128x128xf32>
    %cst_49 = arith.constant 5.000000e-01 : f32
    %81 = vector.broadcast %cst_49 : f32 to vector<1x128x128xf32>
    %82 = arith.cmpf ogt, %80, %81 : vector<1x128x128xf32>
    %83 = arith.extui %82 : vector<1x128x128xi1> to vector<1x128x128xi32>
    %84 = arith.sitofp %83 : vector<1x128x128xi32> to vector<1x128x128xf32>
    %c3_50 = arith.constant 3 : index
    %c0_51 = arith.constant 0 : index
    %c0_52 = arith.constant 0 : index
    %85 = vector.load %arg8[%c3_50, %c0_51, %c0_52] : memref<4x128x128xf32, #tpu.memory_space<vmem>>, vector<1x128x128xf32>
    tpu.vector_store %arg8[%c3_50, %c0_51, %c0_52], %84 {strides = array<i32>} : memref<4x128x128xf32, #tpu.memory_space<vmem>>, vector<1x128x128xf32>,
    return
  }
  func.func @transform_0(%arg0: i32, %arg1: i32) -> (i32, i32, i32) {
    %c0_i32 = arith.constant 0 : i32
    %c0_i32_0 = arith.constant 0 : i32
    return %c0_i32, %arg0, %arg1 : i32, i32, i32
  }
  func.func @transform_1(%arg0: i32, %arg1: i32) -> (i32, i32, i32) {
    %c0_i32 = arith.constant 0 : i32
    %c0_i32_0 = arith.constant 0 : i32
    return %c0_i32, %arg0, %arg1 : i32, i32, i32
  }
  func.func @transform_2(%arg0: i32, %arg1: i32) -> (i32, i32, i32) {
    %c0_i32 = arith.constant 0 : i32
    %c0_i32_0 = arith.constant 0 : i32
    %c0_i32_1 = arith.constant 0 : i32
    return %c0_i32, %c0_i32_0, %arg1 : i32, i32, i32
  }
  func.func @transform_3(%arg0: i32, %arg1: i32) -> (i32, i32, i32) {
    %c0_i32 = arith.constant 0 : i32
    %c0_i32_0 = arith.constant 0 : i32
    %c0_i32_1 = arith.constant 0 : i32
    return %c0_i32, %c0_i32_0, %arg1 : i32, i32, i32
  }
  func.func @transform_4(%arg0: i32, %arg1: i32) -> (i32, i32, i32) {
    %c0_i32 = arith.constant 0 : i32
    %c0_i32_0 = arith.constant 0 : i32
    %c0_i32_1 = arith.constant 0 : i32
    return %c0_i32, %c0_i32_0, %arg1 : i32, i32, i32
  }
  func.func @transform_5(%arg0: i32, %arg1: i32) -> (i32, i32, i32) {
    %c0_i32 = arith.constant 0 : i32
    %c0_i32_0 = arith.constant 0 : i32
    %c0_i32_1 = arith.constant 0 : i32
    return %c0_i32, %c0_i32_0, %arg1 : i32, i32, i32
  }
  func.func @transform_6(%arg0: i32, %arg1: i32) -> (i32, i32, i32) {
    %c0_i32 = arith.constant 0 : i32
    %c0_i32_0 = arith.constant 0 : i32
    return %c0_i32, %arg0, %arg1 : i32, i32, i32
  }
}

</mosaic_0001>

<bundles_post_ra>
// kernel: basic_block_18.5
= control target key start
LH: loop header
LB: loop body
LE: loop exit
PB: predicated region body
PF: predicated region fallthrough
CT: control target
= control target key end

     0   :  { %s843_s12 = smov 0   ;;  %s845_s13 = smov 0   ;;  %s940_s0 = inlined_call_operand.vmem [shape: bf16[512,128], index: 0, kind: input, shape index: {}]   ;;  %s941_s1 = inlined_call_operand.vmem [shape: bf16[128,128], index: 1, kind: input, shape index: {}]   ;;  %s942_s2 = inlined_call_operand.vmem [shape: f32[512,128], index: 2, kind: output, shape index: {0}]   ;;  %s943_s3 = inlined_call_operand.vmem [shape: f32[4,8,128], index: 3, kind: output, shape index: {1}]  }
   0x1   :  { %s847_s14 = smov 0  }
   0x2 LB: > { %s26_s15 = sadd.s32 1, %s817_s13  ;;  %p671_p0 = scmp.ge.s32.totalorder %s821_s14, 1  ;;  %s821_s14 = sphi %s847_s14, %s14_s14   ;;  %s817_s13 = sphi %s845_s13, %s945_s13   ;;  %s813_s12 = sphi %s843_s12, %s944_s12  }
   0x3   : > { %p28_p1 = scmp.ge.s32.totalorder %s26_s15, 4  ;;  %p166_p2 = scmp.lt.s32.totalorder %s821_s14, 5 }
   0x5   : > { %s947_s15 = smov (%p28_p1, %s26_s15), 0  ;;  %p167_p3 = pnand %p671_p0, %p166_p2 }
   0x6   : > { %v783_v0 = vld [vmem:[%s941_s1] sm:$0xff] (!%p167_p3)   ;;  %s672_s18 = sshll.u32 (!%p167_p3), %s813_s12, 4  ;;  %v784_v1 = vld [vmem:[%s941_s1 + $0x8] sm:$0xff] (!%p167_p3)   ;;  %v785_v2 = vld [vmem:[%s941_s1 + $0x10] sm:$0xff] (!%p167_p3)   ;;  %p223_p5 = scmp.lt.s32.totalorder (!%p167_p3), %s813_s12, 3  ;;  %vm530_vm0 = vcmask (!%p167_p3), 1040384  }
   0x7   : > { %170 = sbr.rel (%p167_p3) target bundleno = 301 (0x12d), region = 28  ;;  %p205_p4 = scmp.lt.s32.totalorder (!%p167_p3), %s672_s18, 63  ;;  %711 = vmatprep.subr.bf16.mxu0 (!%p167_p3), %v783_v0  ;;  %743 = vmatprep.subr.bf16.mxu1 (!%p167_p3), %v783_v0  ;;  %v786_v3 = vld [vmem:[%s941_s1 + $0x18] sm:$0xff] (!%p167_p3)   ;;  %v787_v5 = vld [vmem:[%s941_s1 + $0x20] sm:$0xff] (!%p167_p3)   ;;  %v788_v7 = vld [vmem:[%s941_s1 + $0x28] sm:$0xff] (!%p167_p3)   ;;  %vm532_vm1 = vcmask (!%p167_p3), 1041408  }
   0x8   : > { %712 = vmatpush3.bf16.msra.mxu0 (!%p167_p3), %v783_v0  ;;  %751 = vmatpush3.bf16.msra.mxu1 (!%p167_p3), %v783_v0  ;;  %v789_v8 = vld [vmem:[%s941_s1 + $0x30] sm:$0xff] (!%p167_p3)   ;;  %v790_v9 = vld [vmem:[%s941_s1 + $0x38] sm:$0xff] (!%p167_p3)  }
   0x9   : > { %713 = vmatprep.subr.bf16.mxu0 (!%p167_p3), %v784_v1  ;;  %744 = vmatprep.subr.bf16.mxu1 (!%p167_p3), %v784_v1 }
   0xc   : > { %714 = vmatpush3.bf16.msra.mxu0 (!%p167_p3), %v784_v1  ;;  %752 = vmatpush3.bf16.msra.mxu1 (!%p167_p3), %v784_v1 }
   0xd   : > { %715 = vmatprep.subr.bf16.mxu0 (!%p167_p3), %v785_v2  ;;  %745 = vmatprep.subr.bf16.mxu1 (!%p167_p3), %v785_v2 }
   0xe   : > { %s949_s18 = smov (!%p205_p4, %s672_s18), 63  ;;  %s951_s12 = smov (!%p223_p5, %s813_s12), 3 }
   0xf   : > { %s673_s23 = sshll.u32 %s949_s18, 2  ;;  %s675_s10 = sshll.u32 %s949_s18, 3 }
  0x10   : > { %s879_s26 = scalar_lea.vmem %s940_s0, %s673_s23  ;;  %716 = vmatpush3.bf16.msra.mxu0 %v785_v2  ;;  %753 = vmatpush3.bf16.msra.mxu1 %v785_v2  ;;  %s908_s17 = scalar_lea.vmem %s942_s2, %s675_s10 }
  0x11   : > { %v791_v4 = vld [vmem:[%s879_s26] sm:$0xff]   ;;  %717 = vmatprep.subr.bf16.mxu0 %v786_v3  ;;  %746 = vmatprep.subr.bf16.mxu1 %v786_v3  ;;  %v792_v10 = vld [vmem:[%s879_s26 + $0x8] sm:$0xff]   ;;  %v793_v12 = vld [vmem:[%s879_s26 + $0x10] sm:$0xff]   ;;  %s676_s18 = sshll.u32 %s951_s12, 3 }
  0x12   : > { %727 = vmatprep.mubr.bf16.mxu0 %v791_v4  ;;  %v795_v6 = vld [vmem:[%s879_s26 + $0x20] sm:$0xff]   ;;  %v796_v11 = vld [vmem:[%s879_s26 + $0x28] sm:$0xff]   ;;  %v797_v13 = vld [vmem:[%s879_s26 + $0x30] sm:$0xff]   ;;  %s229_s21 = scalar_lea.vmem %s943_s3, %s676_s18 }
  0x13   : > { %735 = vmatprep.mubr.bf16.mxu1 %v795_v6  ;;  %v794_v14 = vld [vmem:[%s879_s26 + $0x18] sm:$0xff]  }
  0x14   : > { %718 = vmatpush3.bf16.msra.mxu0 %v786_v3  ;;  %754 = vmatpush3.bf16.msra.mxu1 %v786_v3  ;;  %v798_v15 = vld [vmem:[%s879_s26 + $0x38] sm:$0xff]  }
  0x15   : > { %719 = vmatprep.subr.bf16.mxu0 %v787_v5  ;;  %747 = vmatprep.subr.bf16.mxu1 %v787_v5 }
  0x18   : > { %720 = vmatpush3.bf16.msra.mxu0 %v787_v5  ;;  %755 = vmatpush3.bf16.msra.mxu1 %v787_v5 }
  0x19   : > { %721 = vmatprep.subr.bf16.mxu0 %v788_v7  ;;  %748 = vmatprep.subr.bf16.mxu1 %v788_v7 }
  0x1c   : > { %722 = vmatpush3.bf16.msra.mxu0 %v788_v7  ;;  %756 = vmatpush3.bf16.msra.mxu1 %v788_v7 }
  0x1d   : > { %723 = vmatprep.subr.bf16.mxu0 %v789_v8  ;;  %749 = vmatprep.subr.bf16.mxu1 %v789_v8 }
  0x20   : > { %724 = vmatpush3.bf16.msra.mxu0 %v789_v8  ;;  %757 = vmatpush3.bf16.msra.mxu1 %v789_v8 }
  0x21   : > { %725 = vmatprep.subr.bf16.mxu0 %v790_v9  ;;  %750 = vmatprep.subr.bf16.mxu1 %v790_v9 }
  0x24   : > { %726 = vmatpush3.bf16.msra.mxu0 %v790_v9  ;;  %758 = vmatpush3.bf16.msra.mxu1 %v790_v9 }
  0x27   : > { %728 = vmatmul.mubr.bf16.vlgmr.msra.gmra.mrb[0].mxu0 %v792_v10  ;;  %736 = vmatmul.mubr.bf16.vlgmr.msra.gmra.mrb[0].mxu1 %v796_v11 }
  0x28   : > { %731 = vmatprep.mubr.bf16.mxu0 %v793_v12  ;;  %739 = vmatprep.mubr.bf16.mxu1 %v797_v13 }
  0x2f   : > { %732 = vmatmul.mubr.bf16.gmra.mrb[4].mxu0 %v794_v14  ;;  %740 = vmatmul.mubr.bf16.gmra.mrb[4].mxu1 %v798_v15 }
  0xfa   : > { %v729_v16 = vpop.f32.mrb[0].mxu0  ;;  %v737_v17 = vpop.f32.mrb[0].mxu1 }
  0xfb   : > { %458 = vst [vmem:[%s908_s17 + $0x10] sm:$0xff] %v729_v16  ;;  %v393_v18 = vpop.f32.mrb[1].mxu0  ;;  %466 = vst [vmem:[%s908_s17 + $0x50] sm:$0xff] %v737_v17  ;;  %v425_v19 = vpop.f32.mrb[1].mxu1  ;;  %v495_v27 = vmul.f32 %v729_v16, %v729_v16  ;;  %v503_v59 = vmul.f32 %v737_v17, %v737_v17 }
  0xfc   : > { %456 = vst [vmem:[%s908_s17] sm:$0xff] %v393_v18  ;;  %v730_v20 = vpop.f32.mrb[2].mxu0  ;;  %464 = vst [vmem:[%s908_s17 + $0x40] sm:$0xff] %v425_v19  ;;  %v738_v21 = vpop.f32.mrb[2].mxu1  ;;  %v493_v24 = vmul.f32 %v393_v18, %v393_v18  ;;  %v501_v53 = vmul.f32 %v425_v19, %v425_v19 }
  0xfd   : > { %459 = vst [vmem:[%s908_s17 + $0x18] sm:$0xff] %v730_v20  ;;  %v396_v22 = vpop.f32.mrb[3].mxu0  ;;  %467 = vst [vmem:[%s908_s17 + $0x58] sm:$0xff] %v738_v21  ;;  %v428_v23 = vpop.f32.mrb[3].mxu1  ;;  %v496_v30 = vmul.f32 %v730_v20, %v730_v20  ;;  %v504_v62 = vmul.f32 %v738_v21, %v738_v21 }
  0xfe   : > { %457 = vst [vmem:[%s908_s17 + $0x8] sm:$0xff] %v396_v22  ;;  %v472_v25 = vadd.f32 %v396_v22, %v393_v18  ;;  %v494_v26 = vmul.f32 %v396_v22, %v396_v22  ;;  %465 = vst [vmem:[%s908_s17 + $0x48] sm:$0xff] %v428_v23  ;;  %v502_v58 = vmul.f32 %v428_v23, %v428_v23 }
 0x100   : > { %v473_v28 = vadd.f32 %v729_v16, %v472_v25  ;;  %v509_v29 = vadd.f32 %v494_v26, %v493_v24 }
 0x102   : > { %v510_v31 = vadd.f32 %v509_v29, %v495_v27  ;;  %v733_v32 = vpop.f32.mrb[4].mxu0  ;;  %v474_v33 = vadd.f32 %v730_v20, %v473_v28  ;;  %v741_v34 = vpop.f32.mrb[4].mxu1 }
 0x103   : > { %462 = vst [vmem:[%s908_s17 + $0x30] sm:$0xff] %v733_v32  ;;  %v409_v35 = vpop.f32.mrb[5].mxu0  ;;  %470 = vst [vmem:[%s908_s17 + $0x70] sm:$0xff] %v741_v34  ;;  %v441_v36 = vpop.f32.mrb[5].mxu1  ;;  %v499_v47 = vmul.f32 %v733_v32, %v733_v32  ;;  %v507_v7 = vmul.f32 %v741_v34, %v741_v34 }
 0x104   : > { %460 = vst [vmem:[%s908_s17 + $0x20] sm:$0xff] %v409_v35  ;;  %v475_v37 = vadd.f32 %v474_v33, %v409_v35  ;;  %v497_v38 = vmul.f32 %v409_v35, %v409_v35  ;;  %v511_v39 = vadd.f32 %v510_v31, %v496_v30  ;;  %v734_v40 = vpop.f32.mrb[6].mxu0  ;;  %468 = vst [vmem:[%s908_s17 + $0x60] sm:$0xff] %v441_v36  ;;  %v742_v41 = vpop.f32.mrb[6].mxu1 }
 0x105   : > { %463 = vst [vmem:[%s908_s17 + $0x38] sm:$0xff] %v734_v40  ;;  %v412_v42 = vpop.f32.mrb[7].mxu0  ;;  %471 = vst [vmem:[%s908_s17 + $0x78] sm:$0xff] %v742_v41  ;;  %v444_v43 = vpop.f32.mrb[7].mxu1  ;;  %v500_v50 = vmul.f32 %v734_v40, %v734_v40  ;;  %v505_v1 = vmul.f32 %v441_v36, %v441_v36  ;;  %v508_v10 = vmul.f32 %v742_v41, %v742_v41 }
 0x106   : > { %v512_v44 = vadd.f32 %v511_v39, %v497_v38  ;;  %461 = vst [vmem:[%s908_s17 + $0x28] sm:$0xff] %v412_v42  ;;  %v476_v45 = vadd.f32 %v475_v37, %v412_v42  ;;  %v498_v46 = vmul.f32 %v412_v42, %v412_v42  ;;  %469 = vst [vmem:[%s908_s17 + $0x68] sm:$0xff] %v444_v43 }
 0x107   : > { %v506_v6 = vmul.f32 %v444_v43, %v444_v43 }
 0x108   : > { %v477_v48 = vadd.f32 %v733_v32, %v476_v45  ;;  %v513_v49 = vadd.f32 %v512_v44, %v498_v46 }
 0x10a   : > { %v514_v51 = vadd.f32 %v513_v49, %v499_v47  ;;  %v478_v52 = vadd.f32 %v734_v40, %v477_v48 }
 0x10c   : > { %v479_v54 = vadd.f32 %v478_v52, %v425_v19  ;;  %v515_v55 = vadd.f32 %v514_v51, %v500_v50 }
 0x10e   : > { %v516_v56 = vadd.f32 %v515_v55, %v501_v53  ;;  %v480_v57 = vadd.f32 %v479_v54, %v428_v23 }
 0x110   : > { %v481_v60 = vadd.f32 %v737_v17, %v480_v57  ;;  %v517_v61 = vadd.f32 %v516_v56, %v502_v58 }
 0x112   : > { %v518_v63 = vadd.f32 %v517_v61, %v503_v59  ;;  %v482_v0 = vadd.f32 %v738_v21, %v481_v60 }
 0x114   : > { %v483_v2 = vadd.f32 %v482_v0, %v441_v36  ;;  %v519_v3 = vadd.f32 %v518_v63, %v504_v62 }
 0x116   : > { %v520_v4 = vadd.f32 %v519_v3, %v505_v1  ;;  %v484_v5 = vadd.f32 %v483_v2, %v444_v43 }
 0x118   : > { %v485_v8 = vadd.f32 %v741_v34, %v484_v5  ;;  %v521_v9 = vadd.f32 %v520_v4, %v506_v6 }
 0x11a   : > { %v486_v11 = vadd.f32 %v742_v41, %v485_v8  ;;  %v522_v12 = vadd.f32 %v521_v9, %v507_v7 }
 0x11c   : > { %v487_v13 = vrot.slane %v486_v11, 4  ;;  %v523_v14 = vadd.f32 %v522_v12, %v508_v10 }
 0x11e   : > { %v488_v15 = vadd.f32 %v487_v13, %v486_v11  ;;  %v524_v16 = vrot.slane %v523_v14, 4 }
 0x120   : > { %v489_v17 = vrot.slane %v488_v15, 2  ;;  %v525_v18 = vadd.f32 %v524_v16, %v523_v14 }
 0x122   : > { %v490_v19 = vadd.f32 %v489_v17, %v488_v15  ;;  %v526_v20 = vrot.slane %v525_v18, 2 }
 0x124   : > { %v491_v21 = vrot.slane %v490_v19, 1  ;;  %v527_v22 = vadd.f32 %v526_v20, %v525_v18 }
 0x126   : > { %v528_v23 = vrot.slane %v527_v22, 1  ;;  %v492_v24 = vadd.f32 %v491_v21, %v490_v19 }
 0x128   : > { %v529_v25 = vadd.f32 %v528_v23, %v527_v22 }
 0x12a   : > { %v531_v26 = vsel %vm530_vm0, %v492_v24, %v529_v25 }
 0x12b   : > { %v533_v27 = vsel %vm532_vm1, %v531_v26, 0.0 }
 0x12c   : > { %534 = vst [vmem:[%s229_s21] sm:$0xff] %v533_v27 }
 0x12d PF: > { %s14_s14 = sadd.s32 1, %s821_s14   ;;  %s944_s12 = smov %s817_s13 }
 0x12e   : > { %p11_p6 = scmp.ge.s32.totalorder %s14_s14, 6   ;;  %s945_s13 = smov %s947_s15 }
 0x130   :  { %13 = sbr.rel (!%p11_p6) target bundleno = 2 (0x2), region = 73 }

// kernel: basic_block_18.6
= control target key start
LH: loop header
LB: loop body
LE: loop exit
PB: predicated region body
PF: predicated region fallthrough
CT: control target
= control target key end

     0   :  { %v1354_v25 = vmov 0.0   ;;  %s2080_s0 = inlined_call_operand.vmem [shape: f32[4,128,128], index: 0, kind: input, shape index: {}]   ;;  %s2081_s1 = inlined_call_operand.vmem [shape: f32[1,1,128], index: 1, kind: input, shape index: {}]   ;;  %s2082_s2 = inlined_call_operand.vmem [shape: f32[1,1,128], index: 2, kind: input, shape index: {}]   ;;  %s2083_s3 = inlined_call_operand.vmem [shape: bf16[4,128,128], index: 3, kind: output, shape index: {}]  }
   0x1   :  { %v1378_v0 = vld [vmem:[%s2081_s1] ss:$0 sm:$0xff]  ;;  %v17_v3 = vld [vmem:[%s2080_s0 + $0x8] sm:$0xff]  ;;  %v18_v5 = vld [vmem:[%s2080_s0 + $0x10] sm:$0xff] }
   0x2   :  { %v1383_v1 = vld [vmem:[%s2082_s2] ss:$0 sm:$0xff]  ;;  %v19_v6 = vld [vmem:[%s2080_s0 + $0x18] sm:$0xff]  ;;  %v39_v7 = vmul.f32 %v1378_v0, %v17_v3  ;;  %v40_v8 = vmul.f32 %v1378_v0, %v18_v5  ;;  %v21_v11 = vld [vmem:[%s2080_s0 + $0x28] sm:$0xff] }
   0x3   :  { %v16_v2 = vld [vmem:[%s2080_s0] sm:$0xff]  ;;  %v41_v9 = vmul.f32 %v1378_v0, %v19_v6  ;;  %v22_v12 = vld [vmem:[%s2080_s0 + $0x30] sm:$0xff]  ;;  %v43_v15 = vmul.f32 %v1378_v0, %v21_v11  ;;  %v23_v16 = vld [vmem:[%s2080_s0 + $0x38] sm:$0xff] }
   0x4   :  { %v38_v4 = vmul.f32 %v1378_v0, %v16_v2  ;;  %v20_v10 = vld [vmem:[%s2080_s0 + $0x20] sm:$0xff]  ;;  %v44_v17 = vmul.f32 %v1378_v0, %v22_v12  ;;  %v61_v18 = vadd.f32 %v1383_v1, %v39_v7  ;;  %v62_v19 = vadd.f32 %v1383_v1, %v40_v8  ;;  %v25_v45 = vld [vmem:[%s2080_s0 + $0x48] sm:$0xff]  ;;  %v26_v56 = vld [vmem:[%s2080_s0 + $0x50] sm:$0xff] }
   0x5   :  { %v42_v14 = vmul.f32 %v1378_v0, %v20_v10  ;;  %v63_v20 = vadd.f32 %v1383_v1, %v41_v9  ;;  %v45_v21 = vmul.f32 %v1378_v0, %v23_v16  ;;  %v1423_v23 = vadd.f32 %v1383_v1, %v43_v15  ;;  %v24_v41 = vld [vmem:[%s2080_s0 + $0x40] sm:$0xff]  ;;  %v27_v57 = vld [vmem:[%s2080_s0 + $0x58] sm:$0xff]  ;;  %v29_v10 = vld [vmem:[%s2080_s0 + $0x68] sm:$0xff] }
   0x6   :  { %v60_v13 = vadd.f32 %v1383_v1, %v38_v4  ;;  %v1426_v24 = vadd.f32 %v1383_v1, %v44_v17  ;;  %vm77_vm1 = vcmp.gt.f32.partialorder %v61_v18, 0.5  ;;  %vm78_vm2 = vcmp.gt.f32.partialorder %v62_v19, 0.5  ;;  %v28_v62 = vld [vmem:[%s2080_s0 + $0x60] sm:$0xff]  ;;  %v30_v16 = vld [vmem:[%s2080_s0 + $0x70] sm:$0xff] }
   0x7   :  { %v64_v22 = vadd.f32 %v1383_v1, %v42_v14  ;;  %vm79_vm3 = vcmp.gt.f32.partialorder %v63_v20, 0.5  ;;  %v937_v27 = vsel %vm77_vm1, 1.0, %v1354_v25  ;;  %v938_v29 = vsel %vm78_vm2, 1.0, %v1354_v25 }
   0x8   :  { %vm76_vm0 = vcmp.gt.f32.partialorder %v60_v13, 0.5  ;;  %v939_v30 = vsel %vm79_vm3, 1.0, %v1354_v25  ;;  %v205_v32 = vsub.f32 1.0, %v937_v27  ;;  %v206_v34 = vsub.f32 1.0, %v938_v29 }
   0x9   :  { %v936_v26 = vsel %vm76_vm0, 1.0, %v1354_v25  ;;  %v1228_v33 = vpack.c.bf16 %v939_v30, %v938_v29  ;;  %v207_v36 = vsub.f32 1.0, %v939_v30  ;;  %vm80_vm4 = vcmp.gt.f32.partialorder %v64_v22, 0.5 }
   0xa   :  { %v204_v28 = vsub.f32 1.0, %v936_v26  ;;  %v1225_v31 = vpack.c.bf16 %v937_v27, %v936_v26  ;;  %vm81_vm5 = vcmp.gt.f32.partialorder %v1423_v23, 0.5  ;;  %v221_v37 = vmul.f32 0.25, %v205_v32  ;;  %v31_v27 = vld [vmem:[%s2080_s0 + $0x78] sm:$0xff] }
   0xb   :  { %1320 = vst [vmem:[%s2083_s3 + $0x8] sm:$0xff] %v1228_v33   ;;  %v222_v38 = vmul.f32 0.25, %v206_v34  ;;  %v940_v39 = vsel %vm80_vm4, 1.0, %v1354_v25  ;;  %v941_v40 = vsel %vm81_vm5, 1.0, %v1354_v25  ;;  %v223_v42 = vmul.f32 0.25, %v207_v36 }
   0xc   :  { %v220_v35 = vmul.f32 0.25, %v204_v28  ;;  %1226 = vst [vmem:[%s2083_s3] sm:$0xff] %v1225_v31   ;;  %v1231_v43 = vpack.c.bf16 %v941_v40, %v940_v39  ;;  %v208_v44 = vsub.f32 1.0, %v940_v39  ;;  %v1449_v47 = vmul.f32 %v221_v37, %v61_v18  ;;  %v968_v39 = vld [vmem:[%s2080_s0 + $0x80] sm:$0xff] }
   0xd   :  { %v209_v48 = vsub.f32 1.0, %v941_v40  ;;  %v67_v49 = vadd.f32 %v1383_v1, %v45_v21  ;;  %v1452_v50 = vmul.f32 %v222_v38, %v62_v19  ;;  %vm82_vm6 = vcmp.gt.f32.partialorder %v1426_v24, 0.5 }
   0xe   :  { %v1447_v46 = vmul.f32 %v220_v35, %v60_v13  ;;  %1321 = vst [vmem:[%s2083_s3 + $0x10] sm:$0xff] %v1231_v43   ;;  %v224_v51 = vmul.f32 0.25, %v208_v44  ;;  %v46_v52 = vmul.f32 %v1378_v0, %v24_v41  ;;  %v1459_v53 = vmul.f32 %v223_v42, %v63_v20  ;;  %v969_v44 = vld [vmem:[%s2080_s0 + $0x88] sm:$0xff] }
   0xf   :  { %vm83_vm7 = vcmp.gt.f32.partialorder %v67_v49, 0.5  ;;  %v942_v54 = vsel %vm82_vm6, 1.0, %v1354_v25  ;;  %v47_v55 = vmul.f32 %v1378_v0, %v25_v45  ;;  %v225_v58 = vmul.f32 0.25, %v209_v48 }
  0x10   :  { %v943_v59 = vsel %vm83_vm7, 1.0, %v1354_v25  ;;  %v210_v60 = vsub.f32 1.0, %v942_v54  ;;  %v68_v61 = vadd.f32 %v1383_v1, %v46_v52  ;;  %v1474_v63 = vmul.f32 %v224_v51, %v64_v22 }
  0x11   :  { %v1234_v2 = vpack.c.bf16 %v943_v59, %v942_v54  ;;  %v211_v3 = vsub.f32 1.0, %v943_v59  ;;  %v69_v4 = vadd.f32 %v1383_v1, %v47_v55  ;;  %v48_v6 = vmul.f32 %v1378_v0, %v26_v56  ;;  %v970_v59 = vld [vmem:[%s2080_s0 + $0x90] sm:$0xff] }
  0x12   :  { %v226_v5 = vmul.f32 0.25, %v210_v60  ;;  %vm84_vm8 = vcmp.gt.f32.partialorder %v68_v61, 0.5  ;;  %v49_v7 = vmul.f32 %v1378_v0, %v27_v57  ;;  %v50_v11 = vmul.f32 %v1378_v0, %v28_v62  ;;  %v971_v60 = vld [vmem:[%s2080_s0 + $0x98] sm:$0xff] }
  0x13   :  { %1322 = vst [vmem:[%s2083_s3 + $0x18] sm:$0xff] %v1234_v2   ;;  %v227_v8 = vmul.f32 0.25, %v211_v3  ;;  %vm85_vm9 = vcmp.gt.f32.partialorder %v69_v4, 0.5  ;;  %v944_v9 = vsel %vm84_vm8, 1.0, %v1354_v25  ;;  %v1488_v12 = vmul.f32 %v225_v58, %v1423_v23 }
  0x14   :  { %v945_v13 = vsel %vm85_vm9, 1.0, %v1354_v25  ;;  %v212_v14 = vsub.f32 1.0, %v944_v9  ;;  %v70_v15 = vadd.f32 %v1383_v1, %v48_v6  ;;  %v1496_v17 = vmul.f32 %v226_v5, %v1426_v24  ;;  %v973_v5 = vld [vmem:[%s2080_s0 + $0xa8] sm:$0xff] }
  0x15   :  { %v1237_v18 = vpack.c.bf16 %v945_v13, %v944_v9  ;;  %v213_v19 = vsub.f32 1.0, %v945_v13  ;;  %v71_v20 = vadd.f32 %v1383_v1, %v49_v7  ;;  %v51_v22 = vmul.f32 %v1378_v0, %v29_v10 }
  0x16   :  { %v228_v21 = vmul.f32 0.25, %v212_v14  ;;  %vm86_vm10 = vcmp.gt.f32.partialorder %v70_v15, 0.5  ;;  %v72_v23 = vadd.f32 %v1383_v1, %v50_v11  ;;  %v1501_v26 = vmul.f32 %v227_v8, %v67_v49 }
  0x17   :  { %1323 = vst [vmem:[%s2083_s3 + $0x20] sm:$0xff] %v1237_v18   ;;  %vm87_vm11 = vcmp.gt.f32.partialorder %v71_v20, 0.5  ;;  %v946_v24 = vsel %vm86_vm10, 1.0, %v1354_v25  ;;  %v52_v28 = vmul.f32 %v1378_v0, %v30_v16  ;;  %v229_v29 = vmul.f32 0.25, %v213_v19 }
  0x18   :  { %v947_v30 = vsel %vm87_vm11, 1.0, %v1354_v25  ;;  %v214_v31 = vsub.f32 1.0, %v946_v24  ;;  %v73_v32 = vadd.f32 %v1383_v1, %v51_v22  ;;  %v1513_v33 = vmul.f32 %v228_v21, %v68_v61 }
  0x19   :  { %v1240_v34 = vpack.c.bf16 %v947_v30, %v946_v24  ;;  %v215_v35 = vsub.f32 1.0, %v947_v30  ;;  %vm88_vm12 = vcmp.gt.f32.partialorder %v72_v23, 0.5  ;;  %v53_v38 = vmul.f32 %v1378_v0, %v31_v27  ;;  %v974_v30 = vld [vmem:[%s2080_s0 + $0xb0] sm:$0xff] }
  0x1a   :  { %v230_v36 = vmul.f32 0.25, %v214_v31  ;;  %vm89_vm13 = vcmp.gt.f32.partialorder %v73_v32, 0.5  ;;  %v948_v37 = vsel %vm88_vm12, 1.0, %v1354_v25  ;;  %v74_v43 = vadd.f32 %v1383_v1, %v52_v28 }
  0x1b   :  { %1324 = vst [vmem:[%s2083_s3 + $0x28] sm:$0xff] %v1240_v34   ;;  %v231_v40 = vmul.f32 0.25, %v215_v35  ;;  %v949_v41 = vsel %vm89_vm13, 1.0, %v1354_v25  ;;  %v216_v42 = vsub.f32 1.0, %v948_v37  ;;  %v1528_v45 = vmul.f32 %v229_v29, %v69_v4  ;;  %v972_v4 = vld [vmem:[%s2080_s0 + $0xa0] sm:$0xff] }
  0x1c   :  { %v1243_v48 = vpack.c.bf16 %v949_v41, %v948_v37  ;;  %v217_v49 = vsub.f32 1.0, %v949_v41  ;;  %v75_v51 = vadd.f32 %v1383_v1, %v53_v38  ;;  %v1531_v52 = vmul.f32 %v230_v36, %v70_v15 }
  0x1d   :  { %v232_v54 = vmul.f32 0.25, %v216_v42  ;;  %vm90_vm14 = vcmp.gt.f32.partialorder %v74_v43, 0.5  ;;  %v269_v55 = vmul.f32 %v968_v39, %v1378_v0  ;;  %v270_v58 = vmul.f32 %v969_v44, %v1378_v0 }
  0x1e   :  { %1325 = vst [vmem:[%s2083_s3 + $0x30] sm:$0xff] %v1243_v48   ;;  %v233_v56 = vmul.f32 0.25, %v217_v49  ;;  %vm91_vm15 = vcmp.gt.f32.partialorder %v75_v51, 0.5  ;;  %v950_v57 = vsel %vm90_vm14, 1.0, %v1354_v25  ;;  %v1545_v61 = vmul.f32 %v231_v40, %v71_v20  ;;  %v976_v49 = vld [vmem:[%s2080_s0 + $0xc0] sm:$0xff] }
  0x1f   :  { %v951_v62 = vsel %vm91_vm15, 1.0, %v1354_v25  ;;  %v218_v2 = vsub.f32 1.0, %v950_v57  ;;  %v285_v3 = vadd.f32 %v1383_v1, %v269_v55  ;;  %v1555_v6 = vmul.f32 %v232_v54, %v72_v23 }
  0x20   :  { %v1246_v7 = vpack.c.bf16 %v951_v62, %v950_v57  ;;  %v219_v8 = vsub.f32 1.0, %v951_v62  ;;  %v286_v9 = vadd.f32 %v1383_v1, %v270_v58  ;;  %v271_v13 = vmul.f32 %v970_v59, %v1378_v0  ;;  %v978_v62 = vld [vmem:[%s2080_s0 + $0xd0] sm:$0xff] }
  0x21   :  { %v234_v10 = vmul.f32 0.25, %v218_v2  ;;  %v301_v11 = vadd.f32 %v285_v3, %v1447_v46  ;;  %v272_v14 = vmul.f32 %v971_v60, %v1378_v0  ;;  %v1561_v15 = vmul.f32 %v233_v56, %v73_v32  ;;  %v977_v56 = vld [vmem:[%s2080_s0 + $0xc8] sm:$0xff]  ;;  %v979_v2 = vld [vmem:[%s2080_s0 + $0xd8] sm:$0xff] }
  0x22   :  { %1326 = vst [vmem:[%s2083_s3 + $0x38] sm:$0xff] %v1246_v7   ;;  %v302_v16 = vadd.f32 %v286_v9, %v1449_v47  ;;  %v273_v18 = vmul.f32 %v972_v4, %v1378_v0  ;;  %v274_v19 = vmul.f32 %v973_v5, %v1378_v0  ;;  %v235_v20 = vmul.f32 0.25, %v219_v8 }
  0x23   :  { %vm317_vm0 = vcmp.gt.f32.partialorder %v301_v11, 0.5  ;;  %v287_v46 = vadd.f32 %v1383_v1, %v271_v13  ;;  %v288_v21 = vadd.f32 %v1383_v1, %v272_v14  ;;  %v1571_v22 = vmul.f32 %v234_v10, %v74_v43 }
  0x24   :  { %vm318_vm1 = vcmp.gt.f32.partialorder %v302_v16, 0.5  ;;  %v984_v23 = vsel %vm317_vm0, 1.0, %v1354_v25  ;;  %v289_v24 = vadd.f32 %v1383_v1, %v273_v18  ;;  %v290_v34 = vadd.f32 %v1383_v1, %v274_v19 }
  0x25   :  { %v985_v27 = vsel %vm318_vm1, 1.0, %v1354_v25  ;;  %v446_v47 = vsub.f32 1.0, %v984_v23  ;;  %v303_v28 = vadd.f32 %v287_v46, %v1452_v50  ;;  %v304_v29 = vadd.f32 %v288_v21, %v1459_v53  ;;  %v975_v50 = vld [vmem:[%s2080_s0 + $0xb8] sm:$0xff] }
  0x26   :  { %v1249_v31 = vpack.c.bf16 %v985_v27, %v984_v23  ;;  %v447_v32 = vsub.f32 1.0, %v985_v27  ;;  %v305_v35 = vadd.f32 %v289_v24, %v1474_v63  ;;  %v1583_v36 = vmul.f32 %v235_v20, %v75_v51 }
  0x27   :  { %v462_v37 = vmul.f32 0.25, %v446_v47  ;;  %vm319_vm2 = vcmp.gt.f32.partialorder %v303_v28, 0.5  ;;  %vm320_vm3 = vcmp.gt.f32.partialorder %v304_v29, 0.5  ;;  %v306_v39 = vadd.f32 %v290_v34, %v1488_v12 }
  0x28   :  { %1327 = vst [vmem:[%s2083_s3 + $0x40] sm:$0xff] %v1249_v31   ;;  %v986_v53 = vsel %vm319_vm2, 1.0, %v1354_v25  ;;  %v987_v38 = vsel %vm320_vm3, 1.0, %v1354_v25  ;;  %v275_v63 = vmul.f32 %v974_v30, %v1378_v0  ;;  %v463_v40 = vmul.f32 0.25, %v447_v32 }
  0x29   :  { %v1252_v41 = vpack.c.bf16 %v987_v38, %v986_v53  ;;  %v448_v42 = vsub.f32 1.0, %v986_v53  ;;  %v449_v43 = vsub.f32 1.0, %v987_v38  ;;  %v1595_v44 = vmul.f32 %v462_v37, %v301_v11  ;;  %v981_v53 = vld [vmem:[%s2080_s0 + $0xe8] sm:$0xff]  ;;  %v982_v38 = vld [vmem:[%s2080_s0 + $0xf0] sm:$0xff] }
  0x2a   :  { %vm321_vm4 = vcmp.gt.f32.partialorder %v305_v35, 0.5  ;;  %vm322_vm5 = vcmp.gt.f32.partialorder %v306_v39, 0.5  ;;  %v276_v48 = vmul.f32 %v975_v50, %v1378_v0  ;;  %v291_v60 = vadd.f32 %v1383_v1, %v275_v63 }
  0x2b   :  { %1328 = vst [vmem:[%s2083_s3 + $0x48] sm:$0xff] %v1252_v41   ;;  %v464_v12 = vmul.f32 0.25, %v448_v42  ;;  %v465_v51 = vmul.f32 0.25, %v449_v43  ;;  %v988_v54 = vsel %vm321_vm4, 1.0, %v1354_v25  ;;  %v989_v55 = vsel %vm322_vm5, 1.0, %v1354_v25  ;;  %v983_v42 = vld [vmem:[%s2080_s0 + $0xf8] sm:$0xff] }
  0x2c   :  { %v1255_v57 = vpack.c.bf16 %v989_v55, %v988_v54  ;;  %v450_v58 = vsub.f32 1.0, %v988_v54  ;;  %v451_v59 = vsub.f32 1.0, %v989_v55  ;;  %v1616_v3 = vmul.f32 %v463_v40, %v302_v16 }
  0x2d   :  { %v1618_v4 = vmul.f32 %v464_v12, %v303_v28  ;;  %v292_v5 = vadd.f32 %v1383_v1, %v276_v48  ;;  %v277_v7 = vmul.f32 %v976_v49, %v1378_v0  ;;  %v1622_v8 = vmul.f32 %v465_v51, %v304_v29  ;;  %v1032_v51 = vld [vmem:[%s2080_s0 + $0x100] sm:$0xff] }
  0x2e   :  { %1329 = vst [vmem:[%s2083_s3 + $0x50] sm:$0xff] %v1255_v57   ;;  %v466_v9 = vmul.f32 0.25, %v450_v58  ;;  %v307_v10 = vadd.f32 %v291_v60, %v1496_v17  ;;  %v278_v11 = vmul.f32 %v977_v56, %v1378_v0  ;;  %v279_v16 = vmul.f32 %v978_v62, %v1378_v0  ;;  %v1033_v58 = vld [vmem:[%s2080_s0 + $0x108] sm:$0xff] }
  0x2f   :  { %v308_v13 = vadd.f32 %v292_v5, %v1501_v26  ;;  %v293_v14 = vadd.f32 %v1383_v1, %v277_v7  ;;  %v280_v18 = vmul.f32 %v979_v2, %v1378_v0  ;;  %v467_v19 = vmul.f32 0.25, %v451_v59 }
  0x30   :  { %v1633_v20 = vmul.f32 %v466_v9, %v305_v35  ;;  %vm323_vm6 = vcmp.gt.f32.partialorder %v307_v10, 0.5  ;;  %v294_v46 = vadd.f32 %v1383_v1, %v278_v11  ;;  %v295_v23 = vadd.f32 %v1383_v1, %v279_v16  ;;  %v1034_v11 = vld [vmem:[%s2080_s0 + $0x110] sm:$0xff] }
  0x31   :  { %vm324_vm7 = vcmp.gt.f32.partialorder %v308_v13, 0.5  ;;  %v990_v21 = vsel %vm323_vm6, 1.0, %v1354_v25  ;;  %v309_v17 = vadd.f32 %v293_v14, %v1513_v33  ;;  %v296_v47 = vadd.f32 %v1383_v1, %v280_v18 }
  0x32   :  { %v991_v26 = vsel %vm324_vm7, 1.0, %v1354_v25  ;;  %v452_v24 = vsub.f32 1.0, %v990_v21  ;;  %v310_v27 = vadd.f32 %v294_v46, %v1528_v45  ;;  %v311_v30 = vadd.f32 %v295_v23, %v1531_v52 }
  0x33   :  { %v1258_v28 = vpack.c.bf16 %v991_v26, %v990_v21  ;;  %v453_v29 = vsub.f32 1.0, %v991_v26  ;;  %vm325_vm8 = vcmp.gt.f32.partialorder %v309_v17, 0.5  ;;  %v1645_v33 = vadd.f32 %v296_v47, %v1545_v61  ;;  %v980_v61 = vld [vmem:[%s2080_s0 + $0xe0] sm:$0xff] }
  0x34   :  { %v468_v31 = vmul.f32 0.25, %v452_v24  ;;  %vm326_vm9 = vcmp.gt.f32.partialorder %v310_v27, 0.5  ;;  %v992_v32 = vsel %vm325_vm8, 1.0, %v1354_v25  ;;  %vm327_vm10 = vcmp.gt.f32.partialorder %v311_v30, 0.5 }
  0x35   :  { %1330 = vst [vmem:[%s2083_s3 + $0x58] sm:$0xff] %v1258_v28   ;;  %v469_v34 = vmul.f32 0.25, %v453_v29  ;;  %v993_v45 = vsel %vm326_vm9, 1.0, %v1354_v25  ;;  %v454_v35 = vsub.f32 1.0, %v992_v32  ;;  %v1651_v37 = vmul.f32 %v467_v19, %v306_v39 }
  0x36   :  { %v1261_v50 = vpack.c.bf16 %v993_v45, %v992_v32  ;;  %v455_v52 = vsub.f32 1.0, %v993_v45  ;;  %vm328_vm11 = vcmp.gt.f32.partialorder %v1645_v33, 0.5  ;;  %v1663_v63 = vmul.f32 %v468_v31, %v307_v10 }
  0x37   :  { %v470_v39 = vmul.f32 0.25, %v454_v35  ;;  %v994_v40 = vsel %vm327_vm10, 1.0, %v1354_v25  ;;  %v995_v41 = vsel %vm328_vm11, 1.0, %v1354_v25  ;;  %v1676_v54 = vmul.f32 %v469_v34, %v308_v13  ;;  %v1035_v13 = vld [vmem:[%s2080_s0 + $0x118] sm:$0xff] }
  0x38   :  { %1331 = vst [vmem:[%s2083_s3 + $0x60] sm:$0xff] %v1261_v50   ;;  %v471_v43 = vmul.f32 0.25, %v455_v52  ;;  %v1264_v48 = vpack.c.bf16 %v995_v41, %v994_v40  ;;  %v456_v49 = vsub.f32 1.0, %v994_v40  ;;  %v457_v12 = vsub.f32 1.0, %v995_v41 }
  0x39   :  { %v281_v55 = vmul.f32 %v980_v61, %v1378_v0  ;;  %v282_v56 = vmul.f32 %v981_v53, %v1378_v0  ;;  %v283_v57 = vmul.f32 %v982_v38, %v1378_v0  ;;  %v1684_v59 = vmul.f32 %v470_v39, %v309_v17  ;;  %v1036_v38 = vld [vmem:[%s2080_s0 + $0x120] sm:$0xff] }
  0x3a   :  { %v1686_v60 = vmul.f32 %v471_v43, %v310_v27  ;;  %1332 = vst [vmem:[%s2083_s3 + $0x68] sm:$0xff] %v1264_v48   ;;  %v472_v62 = vmul.f32 0.25, %v456_v49  ;;  %v284_v2 = vmul.f32 %v983_v42, %v1378_v0  ;;  %v511_v10 = vmul.f32 %v1032_v51, %v1378_v0  ;;  %v1037_v43 = vld [vmem:[%s2080_s0 + $0x128] sm:$0xff]  ;;  %v1038_v48 = vld [vmem:[%s2080_s0 + $0x130] sm:$0xff]  ;;  %v1039_v49 = vld [vmem:[%s2080_s0 + $0x138] sm:$0xff] }
  0x3b   :  { %v297_v5 = vadd.f32 %v1383_v1, %v281_v55  ;;  %v298_v7 = vadd.f32 %v1383_v1, %v282_v56  ;;  %v299_v9 = vadd.f32 %v1383_v1, %v283_v57  ;;  %v473_v14 = vmul.f32 0.25, %v457_v12 }
  0x3c   :  { %v1702_v16 = vmul.f32 %v472_v62, %v311_v30  ;;  %v300_v18 = vadd.f32 %v1383_v1, %v284_v2  ;;  %v512_v19 = vmul.f32 %v1033_v58, %v1378_v0  ;;  %v527_v23 = vadd.f32 %v1383_v1, %v511_v10  ;;  %v1040_v10 = vld [vmem:[%s2080_s0 + $0x140] sm:$0xff] }
  0x3d   :  { %v313_v46 = vadd.f32 %v297_v5, %v1555_v6  ;;  %v314_v21 = vadd.f32 %v298_v7, %v1561_v15  ;;  %v315_v17 = vadd.f32 %v299_v9, %v1571_v22  ;;  %v513_v27 = vmul.f32 %v1034_v11, %v1378_v0 }
  0x3e   :  { %v316_v26 = vadd.f32 %v300_v18, %v1583_v36  ;;  %v528_v24 = vadd.f32 %v1383_v1, %v512_v19  ;;  %v514_v47 = vmul.f32 %v1035_v13, %v1378_v0  ;;  %v1715_v28 = vadd.f32 %v527_v23, %v1595_v44 }
  0x3f   :  { %vm329_vm12 = vcmp.gt.f32.partialorder %v313_v46, 0.5  ;;  %vm330_vm13 = vcmp.gt.f32.partialorder %v314_v21, 0.5  ;;  %vm331_vm14 = vcmp.gt.f32.partialorder %v315_v17, 0.5  ;;  %v529_v52 = vadd.f32 %v1383_v1, %v513_v27 }
  0x40   :  { %v996_v6 = vsel %vm329_vm12, 1.0, %v1354_v25  ;;  %v997_v15 = vsel %vm330_vm13, 1.0, %v1354_v25  ;;  %vm332_vm15 = vcmp.gt.f32.partialorder %v316_v26, 0.5  ;;  %v998_v22 = vsel %vm331_vm14, 1.0, %v1354_v25 }
  0x41   :  { %v1267_v36 = vpack.c.bf16 %v997_v15, %v996_v6  ;;  %v458_v29 = vsub.f32 1.0, %v996_v6  ;;  %v459_v30 = vsub.f32 1.0, %v997_v15  ;;  %v999_v31 = vsel %vm332_vm15, 1.0, %v1354_v25 }
  0x42   :  { %v1270_v32 = vpack.c.bf16 %v999_v31, %v998_v22  ;;  %v460_v34 = vsub.f32 1.0, %v998_v22  ;;  %v461_v45 = vsub.f32 1.0, %v999_v31  ;;  %v1722_v35 = vadd.f32 %v528_v24, %v1616_v3 }
  0x43   :  { %1333 = vst [vmem:[%s2083_s3 + $0x70] sm:$0xff] %v1267_v36   ;;  %v474_v44 = vmul.f32 0.25, %v458_v29  ;;  %v475_v50 = vmul.f32 0.25, %v459_v30  ;;  %vm559_vm0 = vcmp.gt.f32.partialorder %v1715_v28, 0.5  ;;  %v1738_v39 = vmul.f32 %v473_v14, %v1645_v33  ;;  %v1042_v29 = vld [vmem:[%s2080_s0 + $0x150] sm:$0xff] }
  0x44   :  { %1334 = vst [vmem:[%s2083_s3 + $0x78] sm:$0xff] %v1270_v32   ;;  %v476_v61 = vmul.f32 0.25, %v460_v34  ;;  %v477_v53 = vmul.f32 0.25, %v461_v45  ;;  %vm560_vm1 = vcmp.gt.f32.partialorder %v1722_v35, 0.5  ;;  %v1048_v3 = vsel %vm559_vm0, 1.0, %v1354_v25  ;;  %v1043_v45 = vld [vmem:[%s2080_s0 + $0x158] sm:$0xff] }
  0x45   :  { %v1740_v40 = vmul.f32 %v474_v44, %v313_v46  ;;  %v1049_v41 = vsel %vm560_vm1, 1.0, %v1354_v25  ;;  %v688_v42 = vsub.f32 1.0, %v1048_v3  ;;  %v1752_v12 = vmul.f32 %v475_v50, %v314_v21  ;;  %v1041_v21 = vld [vmem:[%s2080_s0 + $0x148] sm:$0xff]  ;;  %v1044_v44 = vld [vmem:[%s2080_s0 + $0x160] sm:$0xff] }
  0x46   :  { %v1754_v33 = vmul.f32 %v476_v61, %v315_v17  ;;  %v1273_v51 = vpack.c.bf16 %v1049_v41, %v1048_v3  ;;  %v689_v55 = vsub.f32 1.0, %v1049_v41  ;;  %v1756_v56 = vmul.f32 %v477_v53, %v316_v26  ;;  %v1045_v3 = vld [vmem:[%s2080_s0 + $0x168] sm:$0xff] }
  0x47   :  { %v530_v57 = vadd.f32 %v1383_v1, %v514_v47  ;;  %v1760_v58 = vadd.f32 %v529_v52, %v1618_v4  ;;  %v515_v62 = vmul.f32 %v1036_v38, %v1378_v0  ;;  %v1766_v2 = vmul.f32 0.25, %v688_v42 }
  0x48   :  { %1335 = vst [vmem:[%s2083_s3 + $0x80] sm:$0xff] %v1273_v51   ;;  %v516_v5 = vmul.f32 %v1037_v43, %v1378_v0  ;;  %v517_v7 = vmul.f32 %v1038_v48, %v1378_v0  ;;  %v518_v9 = vmul.f32 %v1039_v49, %v1378_v0  ;;  %v1774_v4 = vmul.f32 0.25, %v689_v55  ;;  %v1046_v48 = vld [vmem:[%s2080_s0 + $0x170] sm:$0xff] }
  0x49   :  { %v1777_v11 = vadd.f32 %v530_v57, %v1622_v8  ;;  %vm561_vm2 = vcmp.gt.f32.partialorder %v1760_v58, 0.5  ;;  %v531_v13 = vadd.f32 %v1383_v1, %v515_v62  ;;  %v519_v23 = vmul.f32 %v1040_v10, %v1378_v0 }
  0x4a   :  { %v1050_v14 = vsel %vm561_vm2, 1.0, %v1354_v25  ;;  %v532_v18 = vadd.f32 %v1383_v1, %v516_v5  ;;  %v533_v19 = vadd.f32 %v1383_v1, %v517_v7  ;;  %v534_v46 = vadd.f32 %v1383_v1, %v518_v9 }
  0x4b   :  { %vm562_vm3 = vcmp.gt.f32.partialorder %v1777_v11, 0.5  ;;  %v690_v8 = vsub.f32 1.0, %v1050_v14  ;;  %v1790_v17 = vadd.f32 %v531_v13, %v1633_v20  ;;  %v520_v20 = vmul.f32 %v1041_v21, %v1378_v0 }
  0x4c   :  { %v1051_v26 = vsel %vm562_vm3, 1.0, %v1354_v25  ;;  %v1795_v24 = vadd.f32 %v532_v18, %v1651_v37  ;;  %v1798_v27 = vadd.f32 %v533_v19, %v1663_v63  ;;  %v1801_v47 = vadd.f32 %v534_v46, %v1676_v54  ;;  %v1047_v19 = vld [vmem:[%s2080_s0 + $0x178] sm:$0xff] }
  0x4d   :  { %v1276_v6 = vpack.c.bf16 %v1051_v26, %v1050_v14  ;;  %v691_v15 = vsub.f32 1.0, %v1051_v26  ;;  %vm563_vm4 = vcmp.gt.f32.partialorder %v1790_v17, 0.5  ;;  %v1812_v37 = vmul.f32 0.25, %v690_v8 }
  0x4e   :  { %vm564_vm5 = vcmp.gt.f32.partialorder %v1795_v24, 0.5  ;;  %v1052_v22 = vsel %vm563_vm4, 1.0, %v1354_v25  ;;  %vm565_vm6 = vcmp.gt.f32.partialorder %v1798_v27, 0.5  ;;  %vm566_vm7 = vcmp.gt.f32.partialorder %v1801_v47, 0.5 }
  0x4f   :  { %1336 = vst [vmem:[%s2083_s3 + $0x88] sm:$0xff] %v1276_v6   ;;  %v1053_v63 = vsel %vm564_vm5, 1.0, %v1354_v25  ;;  %v692_v54 = vsub.f32 1.0, %v1052_v22  ;;  %v1054_v36 = vsel %vm565_vm6, 1.0, %v1354_v25  ;;  %v1055_v32 = vsel %vm566_vm7, 1.0, %v1354_v25 }
  0x50   :  { %v1279_v30 = vpack.c.bf16 %v1053_v63, %v1052_v22  ;;  %v693_v31 = vsub.f32 1.0, %v1053_v63  ;;  %v694_v34 = vsub.f32 1.0, %v1054_v36  ;;  %v1826_v50 = vmul.f32 0.25, %v691_v15 }
  0x51   :  { %v1282_v52 = vpack.c.bf16 %v1055_v32, %v1054_v36  ;;  %v695_v61 = vsub.f32 1.0, %v1055_v32  ;;  %v535_v53 = vadd.f32 %v1383_v1, %v519_v23  ;;  %v1835_v38 = vmul.f32 0.25, %v692_v54 }
  0x52   :  { %1337 = vst [vmem:[%s2083_s3 + $0x90] sm:$0xff] %v1279_v30   ;;  %v1837_v41 = vmul.f32 0.25, %v693_v31  ;;  %v536_v42 = vadd.f32 %v1383_v1, %v520_v20  ;;  %v521_v43 = vmul.f32 %v1042_v29, %v1378_v0  ;;  %v1847_v49 = vmul.f32 0.25, %v694_v34  ;;  %v1096_v29 = vld [vmem:[%s2080_s0 + $0x180] sm:$0xff] }
  0x53   :  { %1338 = vst [vmem:[%s2083_s3 + $0x98] sm:$0xff] %v1282_v52   ;;  %v1850_v51 = vadd.f32 %v535_v53, %v1684_v59  ;;  %v522_v55 = vmul.f32 %v1043_v45, %v1378_v0  ;;  %v523_v57 = vmul.f32 %v1044_v44, %v1378_v0  ;;  %v1854_v62 = vmul.f32 0.25, %v695_v61  ;;  %v1097_v45 = vld [vmem:[%s2080_s0 + $0x188] sm:$0xff] }
  0x54   :  { %v1857_v5 = vadd.f32 %v536_v42, %v1686_v60  ;;  %v537_v7 = vadd.f32 %v1383_v1, %v521_v43  ;;  %v524_v9 = vmul.f32 %v1045_v3, %v1378_v0  ;;  %v525_v13 = vmul.f32 %v1046_v48, %v1378_v0  ;;  %v1098_v3 = vld [vmem:[%s2080_s0 + $0x190] sm:$0xff]  ;;  %v1099_v42 = vld [vmem:[%s2080_s0 + $0x198] sm:$0xff] }
  0x55   :  { %vm567_vm8 = vcmp.gt.f32.partialorder %v1850_v51, 0.5  ;;  %v538_v10 = vadd.f32 %v1383_v1, %v522_v55  ;;  %v539_v59 = vadd.f32 %v1383_v1, %v523_v57  ;;  %v526_v20 = vmul.f32 %v1047_v19, %v1378_v0 }
  0x56   :  { %vm568_vm9 = vcmp.gt.f32.partialorder %v1857_v5, 0.5  ;;  %v1056_v14 = vsel %vm567_vm8, 1.0, %v1354_v25  ;;  %v1868_v18 = vadd.f32 %v537_v7, %v1702_v16  ;;  %v540_v60 = vadd.f32 %v1383_v1, %v524_v9 }
  0x57   :  { %v1057_v46 = vsel %vm568_vm9, 1.0, %v1354_v25  ;;  %v696_v21 = vsub.f32 1.0, %v1056_v14  ;;  %v1876_v8 = vadd.f32 %v538_v10, %v1738_v39  ;;  %v1879_v23 = vadd.f32 %v539_v59, %v1740_v40 }
  0x58   :  { %v1285_v26 = vpack.c.bf16 %v1057_v46, %v1056_v14  ;;  %v697_v6 = vsub.f32 1.0, %v1057_v46  ;;  %vm569_vm10 = vcmp.gt.f32.partialorder %v1868_v18, 0.5  ;;  %v1883_v16 = vadd.f32 %v540_v60, %v1752_v12 }
  0x59   :  { %vm570_vm11 = vcmp.gt.f32.partialorder %v1876_v8, 0.5  ;;  %v1058_v15 = vsel %vm569_vm10, 1.0, %v1354_v25  ;;  %vm571_vm12 = vcmp.gt.f32.partialorder %v1879_v23, 0.5  ;;  %v1892_v39 = vmul.f32 0.25, %v696_v21 }
  0x5a   :  { %1339 = vst [vmem:[%s2083_s3 + $0xa0] sm:$0xff] %v1285_v26   ;;  %v1059_v40 = vsel %vm570_vm11, 1.0, %v1354_v25  ;;  %v698_v22 = vsub.f32 1.0, %v1058_v15  ;;  %vm572_vm13 = vcmp.gt.f32.partialorder %v1883_v16, 0.5  ;;  %v1060_v54 = vsel %vm571_vm12, 1.0, %v1354_v25  ;;  %v1100_v26 = vld [vmem:[%s2080_s0 + $0x1a0] sm:$0xff] }
  0x5b   :  { %v1288_v12 = vpack.c.bf16 %v1059_v40, %v1058_v15  ;;  %v699_v63 = vsub.f32 1.0, %v1059_v40  ;;  %v1061_v36 = vsel %vm572_vm13, 1.0, %v1354_v25  ;;  %v1901_v30 = vmul.f32 0.25, %v697_v6  ;;  %v1101_v15 = vld [vmem:[%s2080_s0 + $0x1a8] sm:$0xff]  ;;  %v1102_v40 = vld [vmem:[%s2080_s0 + $0x1b0] sm:$0xff] }
  0x5c   :  { %v1291_v31 = vpack.c.bf16 %v1061_v36, %v1060_v54  ;;  %v700_v32 = vsub.f32 1.0, %v1060_v54  ;;  %v701_v34 = vsub.f32 1.0, %v1061_v36  ;;  %v1909_v44 = vmul.f32 0.25, %v698_v22  ;;  %v1103_v54 = vld [vmem:[%s2080_s0 + $0x1b8] sm:$0xff] }
  0x5d   :  { %1340 = vst [vmem:[%s2083_s3 + $0xa8] sm:$0xff] %v1288_v12   ;;  %v1911_v52 = vmul.f32 0.25, %v699_v63  ;;  %v541_v61 = vadd.f32 %v1383_v1, %v525_v13  ;;  %v542_v53 = vadd.f32 %v1383_v1, %v526_v20  ;;  %v720_v55 = vmul.f32 %v1766_v2, %v1715_v28 }
  0x5e   :  { %1341 = vst [vmem:[%s2083_s3 + $0xb0] sm:$0xff] %v1291_v31   ;;  %v1924_v43 = vmul.f32 0.25, %v700_v32  ;;  %v1926_v48 = vmul.f32 0.25, %v701_v34  ;;  %v753_v57 = vmul.f32 %v1096_v29, %v1378_v0  ;;  %v721_v10 = vmul.f32 %v1774_v4, %v1722_v35 }
  0x5f   :  { %v1932_v7 = vadd.f32 %v541_v61, %v1754_v33  ;;  %v1935_v9 = vadd.f32 %v542_v53, %v1756_v56  ;;  %v754_v59 = vmul.f32 %v1097_v45, %v1378_v0  ;;  %v722_v14 = vmul.f32 %v1812_v37, %v1760_v58  ;;  %v1104_v45 = vld [vmem:[%s2080_s0 + $0x1c0] sm:$0xff]  ;;  %v1105_v61 = vld [vmem:[%s2080_s0 + $0x1c8] sm:$0xff] }
  0x60   :  { %v769_v13 = vadd.f32 %v1383_v1, %v753_v57  ;;  %v755_v28 = vmul.f32 %v1098_v3, %v1378_v0  ;;  %v756_v2 = vmul.f32 %v1099_v42, %v1378_v0  ;;  %v723_v35 = vmul.f32 %v1826_v50, %v1777_v11 }
  0x61   :  { %vm573_vm14 = vcmp.gt.f32.partialorder %v1932_v7, 0.5  ;;  %vm574_vm15 = vcmp.gt.f32.partialorder %v1935_v9, 0.5  ;;  %v770_v33 = vadd.f32 %v1383_v1, %v754_v59  ;;  %v724_v21 = vmul.f32 %v1835_v38, %v1790_v17 }
  0x62   :  { %v1062_v56 = vsel %vm573_vm14, 1.0, %v1354_v25  ;;  %v1952_v4 = vsel %vm574_vm15, 1.0, %v1354_v25  ;;  %v785_v60 = vadd.f32 %v769_v13, %v720_v55  ;;  %v771_v58 = vadd.f32 %v1383_v1, %v755_v28 }
  0x63   :  { %v1294_v37 = vpack.c.bf16 %v1952_v4, %v1062_v56  ;;  %v702_v19 = vsub.f32 1.0, %v1062_v56  ;;  %v786_v46 = vadd.f32 %v770_v33, %v721_v10  ;;  %v703_v11 = vsub.f32 1.0, %v1952_v4 }
  0x64   :  { %vm801_vm0 = vcmp.gt.f32.partialorder %v785_v60, 0.5  ;;  %v772_v50 = vadd.f32 %v1383_v1, %v756_v2  ;;  %v787_v6 = vadd.f32 %v771_v58, %v722_v14  ;;  %v725_v38 = vmul.f32 %v1837_v41, %v1795_v24  ;;  %v1106_v14 = vld [vmem:[%s2080_s0 + $0x1d0] sm:$0xff]  ;;  %v1107_v2 = vld [vmem:[%s2080_s0 + $0x1d8] sm:$0xff] }
  0x65   :  { %1342 = vst [vmem:[%s2083_s3 + $0xb8] sm:$0xff] %v1294_v37   ;;  %v1969_v20 = vmul.f32 0.25, %v702_v19  ;;  %vm802_vm1 = vcmp.gt.f32.partialorder %v786_v46, 0.5  ;;  %v1112_v17 = vsel %vm801_vm0, 1.0, %v1354_v25  ;;  %v757_v63 = vmul.f32 %v1100_v26, %v1378_v0  ;;  %v1108_v46 = vld [vmem:[%s2080_s0 + $0x1e0] sm:$0xff] }
  0x66   :  { %v1113_v22 = vsel %vm802_vm1, 1.0, %v1354_v25  ;;  %v788_v12 = vadd.f32 %v772_v50, %v723_v35  ;;  %vm803_vm2 = vcmp.gt.f32.partialorder %v787_v6, 0.5  ;;  %v758_v31 = vmul.f32 %v1101_v15, %v1378_v0 }
  0x67   :  { %v1297_v36 = vpack.c.bf16 %v1113_v22, %v1112_v17  ;;  %v1114_v29 = vsel %vm803_vm2, 1.0, %v1354_v25  ;;  %v726_v24 = vmul.f32 %v1847_v49, %v1798_v27  ;;  %v773_v41 = vadd.f32 %v1383_v1, %v757_v63 }
  0x68   :  { %vm804_vm3 = vcmp.gt.f32.partialorder %v788_v12, 0.5  ;;  %v727_v32 = vmul.f32 %v1854_v62, %v1801_v47  ;;  %v759_v34 = vmul.f32 %v1102_v40, %v1378_v0  ;;  %v774_v49 = vadd.f32 %v1383_v1, %v758_v31  ;;  %v1110_v40 = vld [vmem:[%s2080_s0 + $0x1f0] sm:$0xff] }
  0x69   :  { %1343 = vst [vmem:[%s2083_s3 + $0xc0] sm:$0xff] %v1297_v36   ;;  %v1115_v27 = vsel %vm804_vm3, 1.0, %v1354_v25  ;;  %v760_v47 = vmul.f32 %v1103_v54, %v1378_v0  ;;  %v728_v62 = vmul.f32 %v1892_v39, %v1850_v51  ;;  %v789_v3 = vadd.f32 %v773_v41, %v724_v21  ;;  %v1109_v21 = vld [vmem:[%s2080_s0 + $0x1e8] sm:$0xff] }
  0x6a   :  { %v1300_v53 = vpack.c.bf16 %v1115_v27, %v1114_v29  ;;  %v775_v42 = vadd.f32 %v1383_v1, %v759_v34  ;;  %v729_v55 = vmul.f32 %v1901_v30, %v1857_v5  ;;  %v790_v57 = vadd.f32 %v774_v49, %v725_v38  ;;  %v1352_v30 = vld [vmem:[%s2082_s2] ss:$0 sm:$0xff] }
  0x6b   :  { %v776_v10 = vadd.f32 %v1383_v1, %v760_v47  ;;  %v761_v59 = vmul.f32 %v1104_v45, %v1378_v0  ;;  %v762_v13 = vmul.f32 %v1105_v61, %v1378_v0  ;;  %vm805_vm4 = vcmp.gt.f32.partialorder %v789_v3, 0.5 }
  0x6c   :  { %1344 = vst [vmem:[%s2083_s3 + $0xc8] sm:$0xff] %v1300_v53   ;;  %v791_v51 = vadd.f32 %v775_v42, %v726_v24  ;;  %v730_v5 = vmul.f32 %v1909_v44, %v1868_v18  ;;  %v731_v1 = vmul.f32 %v1911_v52, %v1876_v8  ;;  %vm806_vm5 = vcmp.gt.f32.partialorder %v790_v57, 0.5  ;;  %v1353_v8 = vld [vmem:[%s2081_s1] ss:$0 sm:$0xff] }
  0x6d   :  { %v1116_v39 = vsel %vm805_vm4, 1.0, %v1354_v25  ;;  %v792_v0 = vadd.f32 %v776_v10, %v727_v32  ;;  %v777_v28 = vadd.f32 %v1352_v30, %v761_v59  ;;  %v1117_v33 = vsel %vm806_vm5, 1.0, %v1354_v25 }
  0x6e   :  { %vm807_vm6 = vcmp.gt.f32.partialorder %v791_v51, 0.5  ;;  %v778_v18 = vadd.f32 %v1352_v30, %v762_v13  ;;  %v763_v44 = vmul.f32 %v1353_v8, %v1106_v14  ;;  %v1303_v52 = vpack.c.bf16 %v1117_v33, %v1116_v39 }
  0x6f   :  { %vm808_vm7 = vcmp.gt.f32.partialorder %v792_v0, 0.5  ;;  %v1118_v35 = vsel %vm807_vm6, 1.0, %v1354_v25  ;;  %v793_v56 = vadd.f32 %v777_v28, %v728_v62  ;;  %v764_v37 = vmul.f32 %v1353_v8, %v1107_v2 }
  0x70   :  { %v1119_v60 = vsel %vm808_vm7, 1.0, %v1354_v25  ;;  %v794_v58 = vadd.f32 %v778_v18, %v729_v55  ;;  %v779_v19 = vadd.f32 %v1352_v30, %v763_v44  ;;  %v719_v26 = vmul.f32 0.25, %v703_v11  ;;  %1345 = vst [vmem:[%s2083_s3 + $0xd0] sm:$0xff] %v1303_v52  }
  0x71   :  { %v1306_v50 = vpack.c.bf16 %v1119_v60, %v1118_v35  ;;  %vm809_vm8 = vcmp.gt.f32.partialorder %v793_v56, 0.5  ;;  %v732_v6 = vmul.f32 %v1924_v43, %v1879_v23  ;;  %v780_v17 = vadd.f32 %v1352_v30, %v764_v37  ;;  %v1111_v43 = vld [vmem:[%s2080_s0 + $0x1f8] sm:$0xff] }
  0x72   :  { %vm810_vm9 = vcmp.gt.f32.partialorder %v794_v58, 0.5  ;;  %v1120_v15 = vsel %vm809_vm8, 1.0, %v1354_v25  ;;  %v795_v38 = vadd.f32 %v779_v19, %v730_v5  ;;  %v733_v11 = vmul.f32 %v1926_v48, %v1883_v16 }
  0x73   :  { %1346 = vst [vmem:[%s2083_s3 + $0xd8] sm:$0xff] %v1306_v50   ;;  %v1121_v4 = vsel %vm810_vm9, 1.0, %v1354_v25  ;;  %v765_v22 = vmul.f32 %v1353_v8, %v1108_v46  ;;  %v766_v23 = vmul.f32 %v1353_v8, %v1109_v21  ;;  %v796_v63 = vadd.f32 %v780_v17, %v731_v1 }
  0x74   :  { %v1309_v12 = vpack.c.bf16 %v1121_v4, %v1120_v15  ;;  %vm811_vm10 = vcmp.gt.f32.partialorder %v795_v38, 0.5  ;;  %v734_v54 = vmul.f32 %v1969_v20, %v1932_v7  ;;  %v767_v24 = vmul.f32 %v1353_v8, %v1110_v40 }
  0x75   :  { %v1122_v36 = vsel %vm811_vm10, 1.0, %v1354_v25  ;;  %v781_v29 = vadd.f32 %v1352_v30, %v765_v22  ;;  %v782_v31 = vadd.f32 %v1352_v30, %v766_v23  ;;  %vm812_vm11 = vcmp.gt.f32.partialorder %v796_v63, 0.5 }
  0x76   :  { %1347 = vst [vmem:[%s2083_s3 + $0xe0] sm:$0xff] %v1309_v12   ;;  %v735_v16 = vmul.f32 %v719_v26, %v1935_v9  ;;  %v768_v48 = vmul.f32 %v1353_v8, %v1111_v43  ;;  %v1123_v41 = vsel %vm812_vm11, 1.0, %v1354_v25  ;;  %v783_v45 = vadd.f32 %v1352_v30, %v767_v24 }
  0x77   :  { %v797_v32 = vadd.f32 %v781_v29, %v732_v6  ;;  %v798_v34 = vadd.f32 %v782_v31, %v733_v11  ;;  %v1312_v61 = vpack.c.bf16 %v1123_v41, %v1122_v36 }
  0x78   :  { %v784_v7 = vadd.f32 %v1352_v30, %v768_v48  ;;  %v799_v20 = vadd.f32 %v783_v45, %v734_v54 }
  0x79   :  { %vm813_vm12 = vcmp.gt.f32.partialorder %v797_v32, 0.5  ;;  %vm814_vm13 = vcmp.gt.f32.partialorder %v798_v34, 0.5  ;;  %1348 = vst [vmem:[%s2083_s3 + $0xe8] sm:$0xff] %v1312_v61  }
  0x7a   :  { %v1124_v27 = vsel %vm813_vm12, 1.0, %v1354_v25  ;;  %v1125_v49 = vsel %vm814_vm13, 1.0, %v1354_v25  ;;  %v800_v9 = vadd.f32 %v784_v7, %v735_v16  ;;  %vm815_vm14 = vcmp.gt.f32.partialorder %v799_v20, 0.5 }
  0x7b   :  { %v1315_v47 = vpack.c.bf16 %v1125_v49, %v1124_v27  ;;  %v1126_v62 = vsel %vm815_vm14, 1.0, %v1354_v25 }
  0x7c   :  { %vm816_vm15 = vcmp.gt.f32.partialorder %v800_v9, 0.5 }
  0x7d   :  { %1349 = vst [vmem:[%s2083_s3 + $0xf0] sm:$0xff] %v1315_v47   ;;  %v1127_v53 = vsel %vm816_vm15, 1.0, %v1354_v25 }
  0x7e   :  { %v1318_v3 = vpack.c.bf16 %v1127_v53, %v1126_v62 }
  0x80   :  { %1350 = vst [vmem:[%s2083_s3 + $0xf8] sm:$0xff] %v1318_v3  }

// kernel: basic_block_18.9
= control target key start
LH: loop header
LB: loop body
LE: loop exit
PB: predicated region body
PF: predicated region fallthrough
CT: control target
= control target key end

     0   :  { %v1177_v51 = vmov 0.0   ;;  %s2422_s0 = inlined_call_operand.vmem [shape: f32[4,128,128], index: 0, kind: input, shape index: {}]   ;;  %s2423_s1 = inlined_call_operand.vmem [shape: f32[4,128,128], index: 1, kind: input, shape index: {}]   ;;  %s2424_s2 = inlined_call_operand.vmem [shape: f32[1,1,128], index: 2, kind: input, shape index: {}]   ;;  %s2425_s3 = inlined_call_operand.vmem [shape: f32[1,1,128], index: 3, kind: input, shape index: {}]   ;;  %s2426_s4 = inlined_call_operand.vmem [shape: f32[1,1,128], index: 4, kind: input, shape index: {}]   ;;  %s2427_s5 = inlined_call_operand.vmem [shape: f32[1,1,128], index: 5, kind: input, shape index: {}]   ;;  %s2428_s6 = inlined_call_operand.vmem [shape: f32[4,128,128], index: 6, kind: output, shape index: {}]  }
   0x1   :  { %v1216_v0 = vld [vmem:[%s2424_s2] ss:$0 sm:$0xff]  ;;  %v28_v7 = vld [vmem:[%s2422_s0 + $0x8] sm:$0xff]  ;;  %v29_v9 = vld [vmem:[%s2422_s0 + $0x10] sm:$0xff] }
   0x2   :  { %v1221_v1 = vld [vmem:[%s2426_s4] ss:$0 sm:$0xff]  ;;  %v88_v8 = vld [vmem:[%s2423_s1 + $0x8] sm:$0xff]  ;;  %v50_v11 = vmul.f32 %v1216_v0, %v28_v7  ;;  %v51_v13 = vmul.f32 %v1216_v0, %v29_v9  ;;  %v89_v14 = vld [vmem:[%s2423_s1 + $0x10] sm:$0xff] }
   0x3   :  { %v1226_v2 = vld [vmem:[%s2425_s3] ss:$0 sm:$0xff]  ;;  %v110_v12 = vmul.f32 %v1221_v1, %v88_v8  ;;  %v30_v15 = vld [vmem:[%s2422_s0 + $0x18] sm:$0xff]  ;;  %v111_v18 = vmul.f32 %v1221_v1, %v89_v14  ;;  %v32_v23 = vld [vmem:[%s2422_s0 + $0x28] sm:$0xff] }
   0x4   :  { %v27_v3 = vld [vmem:[%s2422_s0] sm:$0xff]  ;;  %v90_v16 = vld [vmem:[%s2423_s1 + $0x18] sm:$0xff]  ;;  %v52_v19 = vmul.f32 %v1216_v0, %v30_v15  ;;  %v72_v24 = vadd.f32 %v1226_v2, %v50_v11  ;;  %v73_v25 = vadd.f32 %v1226_v2, %v51_v13  ;;  %v92_v28 = vld [vmem:[%s2423_s1 + $0x28] sm:$0xff]  ;;  %v54_v33 = vmul.f32 %v1216_v0, %v32_v23 }
   0x5   :  { %v87_v4 = vld [vmem:[%s2423_s1] sm:$0xff]  ;;  %v49_v5 = vmul.f32 %v1216_v0, %v27_v3  ;;  %v112_v20 = vmul.f32 %v1221_v1, %v90_v16  ;;  %v33_v29 = vld [vmem:[%s2422_s0 + $0x30] sm:$0xff]  ;;  %v114_v34 = vmul.f32 %v1221_v1, %v92_v28  ;;  %v34_v39 = vld [vmem:[%s2422_s0 + $0x38] sm:$0xff] }
   0x6   :  { %v109_v6 = vmul.f32 %v1221_v1, %v87_v4  ;;  %v1248_v10 = vld [vmem:[%s2427_s5] ss:$0 sm:$0xff]  ;;  %v93_v30 = vld [vmem:[%s2423_s1 + $0x30] sm:$0xff]  ;;  %v74_v32 = vadd.f32 %v1226_v2, %v52_v19  ;;  %v126_v35 = vadd.f32 %v110_v12, %v72_v24  ;;  %v127_v36 = vadd.f32 %v111_v18, %v73_v25  ;;  %v94_v7 = vld [vmem:[%s2423_s1 + $0x38] sm:$0xff] }
   0x7   :  { %v71_v17 = vadd.f32 %v1226_v2, %v49_v5  ;;  %v31_v21 = vld [vmem:[%s2422_s0 + $0x20] sm:$0xff]  ;;  %v55_v38 = vmul.f32 %v1216_v0, %v33_v29  ;;  %v76_v42 = vadd.f32 %v1226_v2, %v54_v33  ;;  %v115_v43 = vmul.f32 %v1221_v1, %v93_v30  ;;  %v36_v12 = vld [vmem:[%s2422_s0 + $0x48] sm:$0xff]  ;;  %v38_v30 = vld [vmem:[%s2422_s0 + $0x58] sm:$0xff] }
   0x8   :  { %v91_v22 = vld [vmem:[%s2423_s1 + $0x20] sm:$0xff]  ;;  %v53_v26 = vmul.f32 %v1216_v0, %v31_v21  ;;  %v128_v41 = vadd.f32 %v112_v20, %v74_v32  ;;  %v148_v44 = vadd.f32 %v1248_v10, %v126_v35  ;;  %v149_v45 = vadd.f32 %v1248_v10, %v127_v36  ;;  %v96_v16 = vld [vmem:[%s2423_s1 + $0x48] sm:$0xff]  ;;  %v37_v21 = vld [vmem:[%s2422_s0 + $0x50] sm:$0xff] }
   0x9   :  { %v113_v27 = vmul.f32 %v1221_v1, %v91_v22  ;;  %v125_v31 = vadd.f32 %v109_v6, %v71_v17  ;;  %v77_v47 = vadd.f32 %v1226_v2, %v55_v38  ;;  %v130_v49 = vadd.f32 %v114_v34, %v76_v42  ;;  %v35_v9 = vld [vmem:[%s2422_s0 + $0x40] sm:$0xff]  ;;  %v98_v35 = vld [vmem:[%s2423_s1 + $0x58] sm:$0xff] }
   0xa   :  { %v75_v37 = vadd.f32 %v1226_v2, %v53_v26  ;;  %v150_v48 = vadd.f32 %v1248_v10, %v128_v41  ;;  %v56_v50 = vmul.f32 %v1216_v0, %v34_v39  ;;  %vm164_vm1 = vcmp.gt.f32.partialorder %v148_v44, 0.5  ;;  %v95_v11 = vld [vmem:[%s2423_s1 + $0x40] sm:$0xff]  ;;  %v97_v26 = vld [vmem:[%s2423_s1 + $0x50] sm:$0xff] }
   0xb   :  { %v147_v40 = vadd.f32 %v1248_v10, %v125_v31  ;;  %vm165_vm2 = vcmp.gt.f32.partialorder %v149_v45, 0.5  ;;  %v965_v55 = vsel %vm164_vm1, 1.0, %v1177_v51  ;;  %v1326_v63 = vadd.f32 %v1248_v10, %v130_v49  ;;  %v39_v36 = vld [vmem:[%s2422_s0 + $0x60] sm:$0xff] }
   0xc   :  { %v129_v46 = vadd.f32 %v113_v27, %v75_v37  ;;  %v966_v56 = vsel %vm165_vm2, 1.0, %v1177_v51  ;;  %vm166_vm3 = vcmp.gt.f32.partialorder %v150_v48, 0.5  ;;  %212 = vst [vmem:[%s2428_s6 + $0x8] sm:$0xff] %v965_v55  ;;  %v228_v57 = vsub.f32 1.0, %v965_v55 }
   0xd   :  { %vm163_vm0 = vcmp.gt.f32.partialorder %v147_v40, 0.5  ;;  %213 = vst [vmem:[%s2428_s6 + $0x10] sm:$0xff] %v966_v56  ;;  %v229_v58 = vsub.f32 1.0, %v966_v56  ;;  %v967_v59 = vsel %vm166_vm3, 1.0, %v1177_v51  ;;  %v131_v6 = vadd.f32 %v115_v43, %v77_v47 }
   0xe   :  { %v964_v52 = vsel %vm163_vm0, 1.0, %v1177_v51  ;;  %v1306_v53 = vadd.f32 %v1248_v10, %v129_v46  ;;  %214 = vst [vmem:[%s2428_s6 + $0x18] sm:$0xff] %v967_v59  ;;  %v230_v61 = vsub.f32 1.0, %v967_v59  ;;  %v244_v3 = vmul.f32 0.25, %v228_v57 }
   0xf   :  { %211 = vst [vmem:[%s2428_s6] sm:$0xff] %v964_v52  ;;  %v227_v54 = vsub.f32 1.0, %v964_v52  ;;  %v245_v4 = vmul.f32 0.25, %v229_v58  ;;  %vm168_vm5 = vcmp.gt.f32.partialorder %v1326_v63, 0.5  ;;  %v78_v8 = vadd.f32 %v1226_v2, %v56_v50 }
  0x10   :  { %vm167_vm4 = vcmp.gt.f32.partialorder %v1306_v53, 0.5  ;;  %v246_v14 = vmul.f32 0.25, %v230_v61  ;;  %v969_v15 = vsel %vm168_vm5, 1.0, %v1177_v51  ;;  %v1351_v17 = vmul.f32 %v244_v3, %v148_v44  ;;  %v40_v61 = vld [vmem:[%s2422_s0 + $0x68] sm:$0xff] }
  0x11   :  { %v243_v60 = vmul.f32 0.25, %v227_v54  ;;  %v968_v62 = vsel %vm167_vm4, 1.0, %v1177_v51  ;;  %v1353_v18 = vmul.f32 %v245_v4, %v149_v45  ;;  %216 = vst [vmem:[%s2428_s6 + $0x28] sm:$0xff] %v969_v15  ;;  %v1359_v19 = vadd.f32 %v1248_v10, %v131_v6 }
  0x12   :  { %215 = vst [vmem:[%s2428_s6 + $0x20] sm:$0xff] %v968_v62  ;;  %v231_v5 = vsub.f32 1.0, %v968_v62  ;;  %v116_v20 = vmul.f32 %v1221_v1, %v94_v7  ;;  %v57_v23 = vmul.f32 %v1216_v0, %v35_v9  ;;  %v117_v24 = vmul.f32 %v1221_v1, %v95_v11  ;;  %v100_v9 = vld [vmem:[%s2423_s1 + $0x68] sm:$0xff]  ;;  %v41_v11 = vld [vmem:[%s2422_s0 + $0x70] sm:$0xff] }
  0x13   :  { %v1345_v13 = vmul.f32 %v243_v60, %v147_v40  ;;  %v58_v25 = vmul.f32 %v1216_v0, %v36_v12  ;;  %v232_v27 = vsub.f32 1.0, %v969_v15  ;;  %vm169_vm6 = vcmp.gt.f32.partialorder %v1359_v19, 0.5 }
  0x14   :  { %v247_v22 = vmul.f32 0.25, %v231_v5  ;;  %v132_v28 = vadd.f32 %v116_v20, %v78_v8  ;;  %v118_v29 = vmul.f32 %v1221_v1, %v96_v16  ;;  %v970_v31 = vsel %vm169_vm6, 1.0, %v1177_v51 }
  0x15   :  { %v79_v32 = vadd.f32 %v1226_v2, %v57_v23  ;;  %v80_v33 = vadd.f32 %v1226_v2, %v58_v25  ;;  %v59_v34 = vmul.f32 %v1216_v0, %v37_v21  ;;  %v1386_v37 = vmul.f32 %v246_v14, %v150_v48  ;;  %217 = vst [vmem:[%s2428_s6 + $0x30] sm:$0xff] %v970_v31  ;;  %v99_v48 = vld [vmem:[%s2423_s1 + $0x60] sm:$0xff] }
  0x16   :  { %v233_v38 = vsub.f32 1.0, %v970_v31  ;;  %v154_v39 = vadd.f32 %v1248_v10, %v132_v28  ;;  %v119_v40 = vmul.f32 %v1221_v1, %v97_v26  ;;  %v60_v44 = vmul.f32 %v1216_v0, %v38_v30  ;;  %v42_v26 = vld [vmem:[%s2422_s0 + $0x78] sm:$0xff] }
  0x17   :  { %v133_v41 = vadd.f32 %v117_v24, %v79_v32  ;;  %v134_v42 = vadd.f32 %v118_v29, %v80_v33  ;;  %v81_v43 = vadd.f32 %v1226_v2, %v59_v34  ;;  %v248_v45 = vmul.f32 0.25, %v232_v27  ;;  %v102_v31 = vld [vmem:[%s2423_s1 + $0x78] sm:$0xff]  ;;  %v980_v34 = vld [vmem:[%s2422_s0 + $0x80] sm:$0xff] }
  0x18   :  { %vm170_vm7 = vcmp.gt.f32.partialorder %v154_v39, 0.5  ;;  %v120_v46 = vmul.f32 %v1221_v1, %v98_v35  ;;  %v61_v47 = vmul.f32 %v1216_v0, %v39_v36  ;;  %v249_v55 = vmul.f32 0.25, %v233_v38  ;;  %v996_v35 = vld [vmem:[%s2423_s1 + $0x80] sm:$0xff] }
  0x19   :  { %v971_v49 = vsel %vm170_vm7, 1.0, %v1177_v51  ;;  %v155_v50 = vadd.f32 %v1248_v10, %v133_v41  ;;  %v1403_v52 = vadd.f32 %v1248_v10, %v134_v42  ;;  %v135_v54 = vadd.f32 %v119_v40, %v81_v43  ;;  %v981_v41 = vld [vmem:[%s2422_s0 + $0x88] sm:$0xff] }
  0x1a   :  { %218 = vst [vmem:[%s2428_s6 + $0x38] sm:$0xff] %v971_v49  ;;  %v234_v56 = vsub.f32 1.0, %v971_v49  ;;  %v82_v57 = vadd.f32 %v1226_v2, %v60_v44  ;;  %v83_v58 = vadd.f32 %v1226_v2, %v61_v47  ;;  %v121_v60 = vmul.f32 %v1221_v1, %v99_v48 }
  0x1b   :  { %vm171_vm8 = vcmp.gt.f32.partialorder %v155_v50, 0.5  ;;  %vm172_vm9 = vcmp.gt.f32.partialorder %v1403_v52, 0.5  ;;  %v157_v59 = vadd.f32 %v1248_v10, %v135_v54  ;;  %v1431_v12 = vmul.f32 %v247_v22, %v1306_v53 }
  0x1c   :  { %v250_v62 = vmul.f32 0.25, %v234_v56  ;;  %v972_v3 = vsel %vm171_vm8, 1.0, %v1177_v51  ;;  %v973_v4 = vsel %vm172_vm9, 1.0, %v1177_v51  ;;  %v136_v5 = vadd.f32 %v120_v46, %v82_v57  ;;  %v982_v57 = vld [vmem:[%s2422_s0 + $0x90] sm:$0xff] }
  0x1d   :  { %219 = vst [vmem:[%s2428_s6 + $0x40] sm:$0xff] %v972_v3  ;;  %v235_v6 = vsub.f32 1.0, %v972_v3  ;;  %220 = vst [vmem:[%s2428_s6 + $0x48] sm:$0xff] %v973_v4  ;;  %v236_v7 = vsub.f32 1.0, %v973_v4  ;;  %vm173_vm10 = vcmp.gt.f32.partialorder %v157_v59, 0.5  ;;  %v137_v8 = vadd.f32 %v121_v60, %v83_v58 }
  0x1e   :  { %v974_v14 = vsel %vm173_vm10, 1.0, %v1177_v51  ;;  %v1435_v15 = vadd.f32 %v1248_v10, %v136_v5  ;;  %v62_v16 = vmul.f32 %v1216_v0, %v40_v61  ;;  %v1439_v20 = vmul.f32 %v248_v45, %v1326_v63  ;;  %v101_v63 = vld [vmem:[%s2423_s1 + $0x70] sm:$0xff] }
  0x1f   :  { %v251_v21 = vmul.f32 0.25, %v235_v6  ;;  %221 = vst [vmem:[%s2428_s6 + $0x50] sm:$0xff] %v974_v14  ;;  %v237_v23 = vsub.f32 1.0, %v974_v14  ;;  %v1445_v24 = vadd.f32 %v1248_v10, %v137_v8  ;;  %v122_v22 = vmul.f32 %v1221_v1, %v100_v9  ;;  %v983_v9 = vld [vmem:[%s2422_s0 + $0x98] sm:$0xff] }
  0x20   :  { %vm174_vm11 = vcmp.gt.f32.partialorder %v1435_v15, 0.5  ;;  %v84_v53 = vadd.f32 %v1226_v2, %v62_v16  ;;  %v63_v25 = vmul.f32 %v1216_v0, %v41_v11  ;;  %v1458_v27 = vmul.f32 %v249_v55, %v1359_v19 }
  0x21   :  { %v1460_v28 = vmul.f32 %v250_v62, %v154_v39  ;;  %v252_v29 = vmul.f32 0.25, %v236_v7  ;;  %v975_v30 = vsel %vm174_vm11, 1.0, %v1177_v51  ;;  %v253_v32 = vmul.f32 0.25, %v237_v23 }
  0x22   :  { %222 = vst [vmem:[%s2428_s6 + $0x58] sm:$0xff] %v975_v30  ;;  %vm175_vm12 = vcmp.gt.f32.partialorder %v1445_v24, 0.5  ;;  %v138_v33 = vadd.f32 %v122_v22, %v84_v53  ;;  %v85_v19 = vadd.f32 %v1226_v2, %v63_v25  ;;  %v1477_v36 = vmul.f32 %v251_v21, %v155_v50  ;;  %v997_v50 = vld [vmem:[%s2423_s1 + $0x88] sm:$0xff]  ;;  %v999_v25 = vld [vmem:[%s2423_s1 + $0x98] sm:$0xff] }
  0x23   :  { %v976_v38 = vsel %vm175_vm12, 1.0, %v1177_v51  ;;  %v123_v39 = vmul.f32 %v1221_v1, %v101_v63  ;;  %v64_v40 = vmul.f32 %v1216_v0, %v42_v26  ;;  %v238_v42 = vsub.f32 1.0, %v975_v30  ;;  %v984_v63 = vld [vmem:[%s2422_s0 + $0xa0] sm:$0xff] }
  0x24   :  { %223 = vst [vmem:[%s2428_s6 + $0x60] sm:$0xff] %v976_v38  ;;  %v239_v43 = vsub.f32 1.0, %v976_v38  ;;  %v1489_v44 = vadd.f32 %v1248_v10, %v138_v33  ;;  %v124_v45 = vmul.f32 %v1221_v1, %v102_v31  ;;  %v292_v48 = vmul.f32 %v980_v34, %v1216_v0 }
  0x25   :  { %v139_v46 = vadd.f32 %v123_v39, %v85_v19  ;;  %v86_v47 = vadd.f32 %v1226_v2, %v64_v40  ;;  %v341_v49 = vmul.f32 %v996_v35, %v1221_v1  ;;  %v1499_v54 = vmul.f32 %v252_v29, %v1403_v52  ;;  %v998_v52 = vld [vmem:[%s2423_s1 + $0x90] sm:$0xff] }
  0x26   :  { %v1501_v55 = vmul.f32 %v253_v32, %v157_v59  ;;  %vm176_vm13 = vcmp.gt.f32.partialorder %v1489_v44, 0.5  ;;  %v293_v56 = vmul.f32 %v981_v41, %v1216_v0  ;;  %v308_v62 = vadd.f32 %v1226_v2, %v292_v48 }
  0x27   :  { %v977_v58 = vsel %vm176_vm13, 1.0, %v1177_v51  ;;  %v1510_v60 = vadd.f32 %v1248_v10, %v139_v46  ;;  %v140_v61 = vadd.f32 %v124_v45, %v86_v47  ;;  %v254_v59 = vmul.f32 0.25, %v238_v42  ;;  %v1000_v42 = vld [vmem:[%s2423_s1 + $0xa0] sm:$0xff]  ;;  %v1001_v46 = vld [vmem:[%s2423_s1 + $0xa8] sm:$0xff]  ;;  %v986_v47 = vld [vmem:[%s2422_s0 + $0xb0] sm:$0xff] }
  0x28   :  { %v255_v3 = vmul.f32 0.25, %v239_v43  ;;  %224 = vst [vmem:[%s2428_s6 + $0x68] sm:$0xff] %v977_v58  ;;  %v309_v4 = vadd.f32 %v1226_v2, %v293_v56  ;;  %v342_v5 = vmul.f32 %v997_v50, %v1221_v1  ;;  %v357_v7 = vadd.f32 %v341_v49, %v308_v62 }
  0x29   :  { %vm177_vm14 = vcmp.gt.f32.partialorder %v1510_v60, 0.5  ;;  %v162_v6 = vadd.f32 %v1248_v10, %v140_v61  ;;  %v294_v8 = vmul.f32 %v982_v57, %v1216_v0  ;;  %v240_v11 = vsub.f32 1.0, %v977_v58 }
  0x2a   :  { %v978_v14 = vsel %vm177_vm14, 1.0, %v1177_v51  ;;  %v358_v16 = vadd.f32 %v342_v5, %v309_v4  ;;  %v343_v21 = vmul.f32 %v998_v52, %v1221_v1  ;;  %v373_v53 = vadd.f32 %v1248_v10, %v357_v7 }
  0x2b   :  { %225 = vst [vmem:[%s2428_s6 + $0x70] sm:$0xff] %v978_v14  ;;  %v241_v23 = vsub.f32 1.0, %v978_v14  ;;  %vm178_vm15 = vcmp.gt.f32.partialorder %v162_v6, 0.5  ;;  %v310_v22 = vadd.f32 %v1226_v2, %v294_v8  ;;  %v1541_v26 = vmul.f32 %v254_v59, %v1435_v15  ;;  %v987_v8 = vld [vmem:[%s2422_s0 + $0xb8] sm:$0xff] }
  0x2c   :  { %v979_v29 = vsel %vm178_vm15, 1.0, %v1177_v51  ;;  %v374_v30 = vadd.f32 %v1248_v10, %v358_v16  ;;  %v295_v31 = vmul.f32 %v983_v9, %v1216_v0  ;;  %v1547_v32 = vmul.f32 %v255_v3, %v1445_v24  ;;  %v1002_v3 = vld [vmem:[%s2423_s1 + $0xb0] sm:$0xff] }
  0x2d   :  { %226 = vst [vmem:[%s2428_s6 + $0x78] sm:$0xff] %v979_v29  ;;  %v242_v33 = vsub.f32 1.0, %v979_v29  ;;  %v389_v19 = vadd.f32 %v373_v53, %v1345_v13  ;;  %v359_v34 = vadd.f32 %v343_v21, %v310_v22  ;;  %v344_v38 = vmul.f32 %v999_v25, %v1221_v1  ;;  %v985_v13 = vld [vmem:[%s2422_s0 + $0xa8] sm:$0xff]  ;;  %v1004_v29 = vld [vmem:[%s2423_s1 + $0xc0] sm:$0xff] }
  0x2e   :  { %v390_v15 = vadd.f32 %v374_v30, %v1351_v17  ;;  %v311_v35 = vadd.f32 %v1226_v2, %v295_v31  ;;  %v296_v39 = vmul.f32 %v984_v63, %v1216_v0  ;;  %v256_v40 = vmul.f32 0.25, %v240_v11 }
  0x2f   :  { %v257_v41 = vmul.f32 0.25, %v241_v23  ;;  %vm405_vm0 = vcmp.gt.f32.partialorder %v389_v19, 0.5  ;;  %v375_v24 = vadd.f32 %v1248_v10, %v359_v34  ;;  %v258_v48 = vmul.f32 0.25, %v242_v33  ;;  %v988_v23 = vld [vmem:[%s2422_s0 + $0xc0] sm:$0xff] }
  0x30   :  { %v1012_v17 = vsel %vm405_vm0, 1.0, %v1177_v51  ;;  %vm406_vm1 = vcmp.gt.f32.partialorder %v390_v15, 0.5  ;;  %v360_v43 = vadd.f32 %v344_v38, %v311_v35  ;;  %v312_v45 = vadd.f32 %v1226_v2, %v296_v39 }
  0x31   :  { %1028 = vst [vmem:[%s2428_s6 + $0x80] sm:$0xff] %v1012_v17  ;;  %v470_v49 = vsub.f32 1.0, %v1012_v17  ;;  %v1013_v50 = vsel %vm406_vm1, 1.0, %v1177_v51  ;;  %v1577_v56 = vadd.f32 %v375_v24, %v1353_v18  ;;  %v345_v61 = vmul.f32 %v1000_v42, %v1221_v1 }
  0x32   :  { %1029 = vst [vmem:[%s2428_s6 + $0x88] sm:$0xff] %v1013_v50  ;;  %v471_v57 = vsub.f32 1.0, %v1013_v50  ;;  %v376_v58 = vadd.f32 %v1248_v10, %v360_v43  ;;  %v297_v62 = vmul.f32 %v985_v13, %v1216_v0  ;;  %v1586_v52 = vmul.f32 %v256_v40, %v1489_v44 }
  0x33   :  { %vm407_vm2 = vcmp.gt.f32.partialorder %v1577_v56, 0.5  ;;  %v346_v59 = vmul.f32 %v1001_v46, %v1221_v1  ;;  %v298_v18 = vmul.f32 %v986_v47, %v1216_v0  ;;  %v1595_v4 = vmul.f32 %v257_v41, %v1510_v60  ;;  %v989_v41 = vld [vmem:[%s2422_s0 + $0xc8] sm:$0xff] }
  0x34   :  { %v1014_v5 = vsel %vm407_vm2, 1.0, %v1177_v51  ;;  %v1599_v7 = vadd.f32 %v376_v58, %v1386_v37  ;;  %v361_v44 = vadd.f32 %v345_v61, %v312_v45  ;;  %v1604_v9 = vmul.f32 %v258_v48, %v162_v6  ;;  %v1003_v37 = vld [vmem:[%s2423_s1 + $0xb8] sm:$0xff] }
  0x35   :  { %v486_v11 = vmul.f32 0.25, %v470_v49  ;;  %1030 = vst [vmem:[%s2428_s6 + $0x90] sm:$0xff] %v1014_v5  ;;  %v313_v60 = vadd.f32 %v1226_v2, %v297_v62  ;;  %v314_v14 = vadd.f32 %v1226_v2, %v298_v18  ;;  %v487_v16 = vmul.f32 0.25, %v471_v57 }
  0x36   :  { %vm408_vm3 = vcmp.gt.f32.partialorder %v1599_v7, 0.5  ;;  %v377_v21 = vadd.f32 %v1248_v10, %v361_v44  ;;  %v347_v6 = vmul.f32 %v1002_v3, %v1221_v1  ;;  %v472_v53 = vsub.f32 1.0, %v1014_v5 }
  0x37   :  { %v1015_v22 = vsel %vm408_vm3, 1.0, %v1177_v51  ;;  %v362_v25 = vadd.f32 %v346_v59, %v313_v60  ;;  %v299_v63 = vmul.f32 %v987_v8, %v1216_v0  ;;  %v348_v34 = vmul.f32 %v1003_v37, %v1221_v1 }
  0x38   :  { %1031 = vst [vmem:[%s2428_s6 + $0x98] sm:$0xff] %v1015_v22  ;;  %v473_v30 = vsub.f32 1.0, %v1015_v22  ;;  %v1629_v31 = vadd.f32 %v377_v21, %v1431_v12  ;;  %v363_v33 = vadd.f32 %v347_v6, %v314_v14  ;;  %v1632_v35 = vmul.f32 %v486_v11, %v389_v19  ;;  %v1005_v19 = vld [vmem:[%s2423_s1 + $0xc8] sm:$0xff]  ;;  %v991_v14 = vld [vmem:[%s2422_s0 + $0xd8] sm:$0xff] }
  0x39   :  { %v378_v38 = vadd.f32 %v1248_v10, %v362_v25  ;;  %v315_v39 = vadd.f32 %v1226_v2, %v299_v63  ;;  %v300_v40 = vmul.f32 %v988_v23, %v1216_v0  ;;  %v1640_v24 = vmul.f32 %v487_v16, %v390_v15  ;;  %v992_v25 = vld [vmem:[%s2422_s0 + $0xe0] sm:$0xff] }
  0x3a   :  { %vm409_vm4 = vcmp.gt.f32.partialorder %v1629_v31, 0.5  ;;  %v379_v12 = vadd.f32 %v1248_v10, %v363_v33  ;;  %v349_v42 = vmul.f32 %v1004_v29, %v1221_v1  ;;  %v488_v46 = vmul.f32 0.25, %v472_v53  ;;  %v1007_v53 = vld [vmem:[%s2423_s1 + $0xd8] sm:$0xff]  ;;  %v1008_v63 = vld [vmem:[%s2423_s1 + $0xe0] sm:$0xff] }
  0x3b   :  { %v1016_v13 = vsel %vm409_vm4, 1.0, %v1177_v51  ;;  %v394_v17 = vadd.f32 %v378_v38, %v1439_v20  ;;  %v364_v43 = vadd.f32 %v348_v34, %v315_v39  ;;  %v316_v45 = vadd.f32 %v1226_v2, %v300_v40  ;;  %v990_v20 = vld [vmem:[%s2422_s0 + $0xd0] sm:$0xff] }
  0x3c   :  { %v489_v15 = vmul.f32 0.25, %v473_v30  ;;  %1032 = vst [vmem:[%s2428_s6 + $0xa0] sm:$0xff] %v1016_v13  ;;  %v395_v47 = vadd.f32 %v379_v12, %v1458_v27  ;;  %v301_v48 = vmul.f32 %v989_v41, %v1216_v0  ;;  %v350_v57 = vmul.f32 %v1005_v19, %v1221_v1  ;;  %v1006_v27 = vld [vmem:[%s2423_s1 + $0xd0] sm:$0xff]  ;;  %v993_v12 = vld [vmem:[%s2422_s0 + $0xe8] sm:$0xff] }
  0x3d   :  { %vm410_vm5 = vcmp.gt.f32.partialorder %v394_v17, 0.5  ;;  %v380_v49 = vadd.f32 %v1248_v10, %v364_v43  ;;  %v365_v50 = vadd.f32 %v349_v42, %v316_v45  ;;  %v474_v58 = vsub.f32 1.0, %v1016_v13  ;;  %v1009_v13 = vld [vmem:[%s2423_s1 + $0xe8] sm:$0xff]  ;;  %v994_v43 = vld [vmem:[%s2422_s0 + $0xf0] sm:$0xff] }
  0x3e   :  { %v1017_v61 = vsel %vm410_vm5, 1.0, %v1177_v51  ;;  %vm411_vm6 = vcmp.gt.f32.partialorder %v395_v47, 0.5  ;;  %v317_v62 = vadd.f32 %v1226_v2, %v301_v48  ;;  %v1673_v44 = vmul.f32 %v488_v46, %v1577_v56 }
  0x3f   :  { %1033 = vst [vmem:[%s2428_s6 + $0xa8] sm:$0xff] %v1017_v61  ;;  %v475_v59 = vsub.f32 1.0, %v1017_v61  ;;  %v1018_v18 = vsel %vm411_vm6, 1.0, %v1177_v51  ;;  %v396_v3 = vadd.f32 %v380_v49, %v1460_v28  ;;  %v381_v5 = vadd.f32 %v1248_v10, %v365_v50 }
  0x40   :  { %1034 = vst [vmem:[%s2428_s6 + $0xb0] sm:$0xff] %v1018_v18  ;;  %v476_v8 = vsub.f32 1.0, %v1018_v18  ;;  %v366_v11 = vadd.f32 %v350_v57, %v317_v62  ;;  %v302_v60 = vmul.f32 %v990_v20, %v1216_v0  ;;  %v1683_v37 = vmul.f32 %v489_v15, %v1599_v7  ;;  %v1011_v18 = vld [vmem:[%s2423_s1 + $0xf8] sm:$0xff] }
  0x41   :  { %vm412_vm7 = vcmp.gt.f32.partialorder %v396_v3, 0.5  ;;  %v1686_v28 = vadd.f32 %v381_v5, %v1477_v36  ;;  %v351_v56 = vmul.f32 %v1006_v27, %v1221_v1  ;;  %v490_v16 = vmul.f32 0.25, %v474_v58 }
  0x42   :  { %v1019_v21 = vsel %vm412_vm7, 1.0, %v1177_v51  ;;  %v382_v6 = vadd.f32 %v1248_v10, %v366_v11  ;;  %v318_v23 = vadd.f32 %v1226_v2, %v302_v60  ;;  %v491_v22 = vmul.f32 0.25, %v475_v59  ;;  %v995_v59 = vld [vmem:[%s2422_s0 + $0xf8] sm:$0xff] }
  0x43   :  { %1035 = vst [vmem:[%s2428_s6 + $0xb8] sm:$0xff] %v1019_v21  ;;  %v477_v36 = vsub.f32 1.0, %v1019_v21  ;;  %vm413_vm8 = vcmp.gt.f32.partialorder %v1686_v28, 0.5  ;;  %v303_v7 = vmul.f32 %v991_v14, %v1216_v0  ;;  %v492_v29 = vmul.f32 0.25, %v476_v8  ;;  %v1044_v21 = vld [vmem:[%s2422_s0 + $0x100] sm:$0xff] }
  0x44   :  { %v1020_v30 = vsel %vm413_vm8, 1.0, %v1177_v51  ;;  %v1708_v33 = vadd.f32 %v382_v6, %v1499_v54  ;;  %v367_v34 = vadd.f32 %v351_v56, %v318_v23  ;;  %v352_v41 = vmul.f32 %v1007_v53, %v1221_v1  ;;  %v1060_v53 = vld [vmem:[%s2423_s1 + $0x100] sm:$0xff] }
  0x45   :  { %v493_v38 = vmul.f32 0.25, %v477_v36  ;;  %1036 = vst [vmem:[%s2428_s6 + $0xc0] sm:$0xff] %v1020_v30  ;;  %v478_v39 = vsub.f32 1.0, %v1020_v30  ;;  %v319_v40 = vadd.f32 %v1226_v2, %v303_v7  ;;  %v304_v42 = vmul.f32 %v992_v25, %v1216_v0 }
  0x46   :  { %vm414_vm9 = vcmp.gt.f32.partialorder %v1708_v33, 0.5  ;;  %v383_v54 = vadd.f32 %v1248_v10, %v367_v34  ;;  %v353_v19 = vmul.f32 %v1008_v63, %v1221_v1  ;;  %v1729_v45 = vmul.f32 %v490_v16, %v1629_v31  ;;  %v1010_v31 = vld [vmem:[%s2423_s1 + $0xf0] sm:$0xff] }
  0x47   :  { %v1731_v46 = vmul.f32 %v491_v22, %v394_v17  ;;  %v1021_v15 = vsel %vm414_vm9, 1.0, %v1177_v51  ;;  %v368_v48 = vadd.f32 %v352_v41, %v319_v40  ;;  %v1734_v49 = vmul.f32 %v492_v29, %v395_v47 }
  0x48   :  { %1037 = vst [vmem:[%s2428_s6 + $0xc8] sm:$0xff] %v1021_v15  ;;  %v1740_v50 = vadd.f32 %v383_v54, %v1501_v55  ;;  %v320_v57 = vadd.f32 %v1226_v2, %v304_v42  ;;  %v305_v20 = vmul.f32 %v993_v12, %v1216_v0  ;;  %v1747_v17 = vmul.f32 %v493_v38, %v396_v3 }
  0x49   :  { %v384_v47 = vadd.f32 %v1248_v10, %v368_v48  ;;  %v354_v58 = vmul.f32 %v1009_v13, %v1221_v1  ;;  %v306_v61 = vmul.f32 %v994_v43, %v1216_v0  ;;  %v494_v62 = vmul.f32 0.25, %v478_v39  ;;  %v1046_v48 = vld [vmem:[%s2422_s0 + $0x110] sm:$0xff] }
  0x4a   :  { %vm415_vm10 = vcmp.gt.f32.partialorder %v1740_v50, 0.5  ;;  %v369_v55 = vadd.f32 %v353_v19, %v320_v57  ;;  %v321_v27 = vadd.f32 %v1226_v2, %v305_v20  ;;  %v355_v11 = vmul.f32 %v1010_v31, %v1221_v1 }
  0x4b   :  { %v1022_v3 = vsel %vm415_vm10, 1.0, %v1177_v51  ;;  %v400_v5 = vadd.f32 %v384_v47, %v1541_v26  ;;  %v322_v8 = vadd.f32 %v1226_v2, %v306_v61  ;;  %v479_v60 = vsub.f32 1.0, %v1021_v15 }
  0x4c   :  { %1038 = vst [vmem:[%s2428_s6 + $0xd0] sm:$0xff] %v1022_v3  ;;  %v480_v14 = vsub.f32 1.0, %v1022_v3  ;;  %v385_v56 = vadd.f32 %v1248_v10, %v369_v55  ;;  %v370_v16 = vadd.f32 %v354_v58, %v321_v27  ;;  %v307_v26 = vmul.f32 %v995_v59, %v1216_v0  ;;  %v1062_v58 = vld [vmem:[%s2423_s1 + $0x110] sm:$0xff] }
  0x4d   :  { %vm416_vm11 = vcmp.gt.f32.partialorder %v400_v5, 0.5  ;;  %v371_v6 = vadd.f32 %v355_v11, %v322_v8  ;;  %v356_v23 = vmul.f32 %v1011_v18, %v1221_v1  ;;  %v1777_v22 = vmul.f32 %v494_v62, %v1686_v28  ;;  %v1045_v28 = vld [vmem:[%s2422_s0 + $0x108] sm:$0xff]  ;;  %v1047_v8 = vld [vmem:[%s2422_s0 + $0x118] sm:$0xff] }
  0x4e   :  { %v1023_v36 = vsel %vm416_vm11, 1.0, %v1177_v51  ;;  %v1781_v7 = vadd.f32 %v385_v56, %v1547_v32  ;;  %v386_v25 = vadd.f32 %v1248_v10, %v370_v16  ;;  %v323_v30 = vadd.f32 %v1226_v2, %v307_v26 }
  0x4f   :  { %1039 = vst [vmem:[%s2428_s6 + $0xd8] sm:$0xff] %v1023_v36  ;;  %v481_v63 = vsub.f32 1.0, %v1023_v36  ;;  %v387_v29 = vadd.f32 %v1248_v10, %v371_v6  ;;  %v535_v34 = vmul.f32 %v1044_v21, %v1216_v0  ;;  %v495_v38 = vmul.f32 0.25, %v479_v60  ;;  %v1064_v36 = vld [vmem:[%s2423_s1 + $0x120] sm:$0xff] }
  0x50   :  { %vm417_vm12 = vcmp.gt.f32.partialorder %v1781_v7, 0.5  ;;  %v402_v32 = vadd.f32 %v386_v25, %v1586_v52  ;;  %v584_v39 = vmul.f32 %v1060_v53, %v1221_v1  ;;  %v496_v40 = vmul.f32 0.25, %v480_v14  ;;  %v1061_v52 = vld [vmem:[%s2423_s1 + $0x108] sm:$0xff] }
  0x51   :  { %v1024_v41 = vsel %vm417_vm12, 1.0, %v1177_v51  ;;  %v1798_v12 = vadd.f32 %v387_v29, %v1595_v4  ;;  %v372_v54 = vadd.f32 %v356_v23, %v323_v30  ;;  %v497_v42 = vmul.f32 0.25, %v481_v63  ;;  %v1049_v29 = vld [vmem:[%s2422_s0 + $0x128] sm:$0xff] }
  0x52   :  { %1040 = vst [vmem:[%s2428_s6 + $0xe0] sm:$0xff] %v1024_v41  ;;  %vm418_vm13 = vcmp.gt.f32.partialorder %v402_v32, 0.5  ;;  %v551_v19 = vadd.f32 %v1226_v2, %v535_v34  ;;  %v536_v13 = vmul.f32 %v1045_v28, %v1216_v0  ;;  %v482_v43 = vsub.f32 1.0, %v1024_v41 }
  0x53   :  { %v1025_v15 = vsel %vm418_vm13, 1.0, %v1177_v51  ;;  %vm419_vm14 = vcmp.gt.f32.partialorder %v1798_v12, 0.5  ;;  %v388_v4 = vadd.f32 %v1248_v10, %v372_v54  ;;  %v1815_v57 = vmul.f32 %v495_v38, %v1708_v33  ;;  %v1065_v54 = vld [vmem:[%s2423_s1 + $0x128] sm:$0xff] }
  0x54   :  { %1041 = vst [vmem:[%s2428_s6 + $0xe8] sm:$0xff] %v1025_v15  ;;  %v483_v20 = vsub.f32 1.0, %v1025_v15  ;;  %v1026_v31 = vsel %vm419_vm14, 1.0, %v1177_v51  ;;  %v600_v47 = vadd.f32 %v584_v39, %v551_v19  ;;  %v552_v62 = vadd.f32 %v1226_v2, %v536_v13  ;;  %v1050_v19 = vld [vmem:[%s2422_s0 + $0x130] sm:$0xff] }
  0x55   :  { %1042 = vst [vmem:[%s2428_s6 + $0xf0] sm:$0xff] %v1026_v31  ;;  %v484_v61 = vsub.f32 1.0, %v1026_v31  ;;  %v404_v33 = vadd.f32 %v388_v4, %v1604_v9  ;;  %v585_v55 = vmul.f32 %v1061_v52, %v1221_v1  ;;  %v1831_v27 = vmul.f32 %v496_v40, %v1740_v50  ;;  %v1063_v50 = vld [vmem:[%s2423_s1 + $0x118] sm:$0xff]  ;;  %v1066_v13 = vld [vmem:[%s2423_s1 + $0x130] sm:$0xff] }
  0x56   :  { %v1833_v59 = vmul.f32 %v497_v42, %v400_v5  ;;  %v616_v18 = vadd.f32 %v1248_v10, %v600_v47  ;;  %v537_v3 = vmul.f32 %v1046_v48, %v1216_v0  ;;  %v498_v11 = vmul.f32 0.25, %v482_v43  ;;  %v1048_v5 = vld [vmem:[%s2422_s0 + $0x120] sm:$0xff] }
  0x57   :  { %vm420_vm15 = vcmp.gt.f32.partialorder %v404_v33, 0.5  ;;  %v601_v9 = vadd.f32 %v585_v55, %v552_v62  ;;  %v586_v60 = vmul.f32 %v1062_v58, %v1221_v1  ;;  %v499_v14 = vmul.f32 0.25, %v483_v20  ;;  %v1067_v62 = vld [vmem:[%s2423_s1 + $0x138] sm:$0xff]  ;;  %v1052_v55 = vld [vmem:[%s2422_s0 + $0x140] sm:$0xff] }
  0x58   :  { %v1027_v56 = vsel %vm420_vm15, 1.0, %v1177_v51  ;;  %v1849_v16 = vadd.f32 %v616_v18, %v1632_v35  ;;  %v553_v21 = vadd.f32 %v1226_v2, %v537_v3  ;;  %v500_v6 = vmul.f32 0.25, %v484_v61 }
  0x59   :  { %1043 = vst [vmem:[%s2428_s6 + $0xf8] sm:$0xff] %v1027_v56  ;;  %v485_v26 = vsub.f32 1.0, %v1027_v56  ;;  %v617_v23 = vadd.f32 %v1248_v10, %v601_v9  ;;  %v538_v53 = vmul.f32 %v1047_v8, %v1216_v0  ;;  %v587_v25 = vmul.f32 %v1063_v50, %v1221_v1  ;;  %v1068_v56 = vld [vmem:[%s2423_s1 + $0x140] sm:$0xff] }
  0x5a   :  { %vm648_vm0 = vcmp.gt.f32.partialorder %v1849_v16, 0.5  ;;  %v602_v35 = vadd.f32 %v586_v60, %v553_v21  ;;  %v539_v63 = vmul.f32 %v1048_v5, %v1216_v0  ;;  %v1867_v30 = vmul.f32 %v498_v11, %v1781_v7 }
  0x5b   :  { %v1076_v34 = vsel %vm648_vm0, 1.0, %v1177_v51  ;;  %v1871_v28 = vadd.f32 %v617_v23, %v1640_v24  ;;  %v554_v38 = vadd.f32 %v1226_v2, %v538_v53  ;;  %v1874_v39 = vmul.f32 %v499_v14, %v402_v32  ;;  %v1957_v23 = vld [vmem:[%s2425_s3] ss:$0 sm:$0xff] }
  0x5c   :  { %1092 = vst [vmem:[%s2428_s6 + $0x100] sm:$0xff] %v1076_v34  ;;  %v618_v40 = vadd.f32 %v1248_v10, %v602_v35  ;;  %v555_v41 = vadd.f32 %v1226_v2, %v539_v63  ;;  %v588_v7 = vmul.f32 %v1064_v36, %v1221_v1  ;;  %v501_v24 = vmul.f32 0.25, %v485_v26 }
  0x5d   :  { %vm649_vm1 = vcmp.gt.f32.partialorder %v1871_v28, 0.5  ;;  %v603_v42 = vadd.f32 %v587_v25, %v554_v38  ;;  %v540_v32 = vmul.f32 %v1049_v29, %v1216_v0  ;;  %v1894_v52 = vmul.f32 %v500_v6, %v1798_v12  ;;  %v1051_v12 = vld [vmem:[%s2422_s0 + $0x138] sm:$0xff]  ;;  %v1053_v6 = vld [vmem:[%s2422_s0 + $0x148] sm:$0xff] }
  0x5e   :  { %v1077_v43 = vsel %vm649_vm1, 1.0, %v1177_v51  ;;  %v1898_v15 = vadd.f32 %v618_v40, %v1673_v44  ;;  %v604_v4 = vadd.f32 %v588_v7, %v555_v41  ;;  %v713_v48 = vsub.f32 1.0, %v1076_v34  ;;  %v1069_v29 = vld [vmem:[%s2423_s1 + $0x148] sm:$0xff]  ;;  %v1054_v41 = vld [vmem:[%s2422_s0 + $0x150] sm:$0xff] }
  0x5f   :  { %1093 = vst [vmem:[%s2428_s6 + $0x108] sm:$0xff] %v1077_v43  ;;  %v619_v20 = vadd.f32 %v1248_v10, %v603_v42  ;;  %v556_v31 = vadd.f32 %v1226_v2, %v540_v32  ;;  %v589_v47 = vmul.f32 %v1065_v54, %v1221_v1  ;;  %v541_v58 = vmul.f32 %v1050_v19, %v1216_v0  ;;  %v1070_v7 = vld [vmem:[%s2423_s1 + $0x150] sm:$0xff] }
  0x60   :  { %vm650_vm2 = vcmp.gt.f32.partialorder %v1898_v15, 0.5  ;;  %v620_v44 = vadd.f32 %v1248_v10, %v604_v4  ;;  %v590_v61 = vmul.f32 %v1066_v13, %v1221_v1  ;;  %v1919_v18 = vmul.f32 %v501_v24, %v404_v33  ;;  %v2001_v13 = vld [vmem:[%s2427_s5] ss:$0 sm:$0xff] }
  0x61   :  { %v1078_v3 = vsel %vm650_vm2, 1.0, %v1177_v51  ;;  %v1923_v8 = vadd.f32 %v619_v20, %v1683_v37  ;;  %v605_v11 = vadd.f32 %v589_v47, %v556_v31  ;;  %v714_v9 = vsub.f32 1.0, %v1077_v43 }
  0x62   :  { %1094 = vst [vmem:[%s2428_s6 + $0x110] sm:$0xff] %v1078_v3  ;;  %v1929_v60 = vadd.f32 %v620_v44, %v1729_v45  ;;  %v557_v50 = vadd.f32 %v1226_v2, %v541_v58  ;;  %v542_v5 = vmul.f32 %v1051_v12, %v1216_v0  ;;  %v591_v37 = vmul.f32 %v1067_v62, %v1221_v1  ;;  %v1071_v12 = vld [vmem:[%s2423_s1 + $0x158] sm:$0xff]  ;;  %v1056_v44 = vld [vmem:[%s2422_s0 + $0x160] sm:$0xff] }
  0x63   :  { %vm651_vm3 = vcmp.gt.f32.partialorder %v1923_v8, 0.5  ;;  %v621_v33 = vadd.f32 %v1248_v10, %v605_v11  ;;  %v543_v14 = vmul.f32 %v1052_v55, %v1216_v0  ;;  %v715_v21 = vsub.f32 1.0, %v1078_v3 }
  0x64   :  { %v1079_v45 = vsel %vm651_vm3, 1.0, %v1177_v51  ;;  %vm652_vm4 = vcmp.gt.f32.partialorder %v1929_v60, 0.5  ;;  %v606_v2 = vadd.f32 %v590_v61, %v557_v50  ;;  %v1945_v26 = vmul.f32 0.25, %v713_v48 }
  0x65   :  { %1095 = vst [vmem:[%s2428_s6 + $0x118] sm:$0xff] %v1079_v45  ;;  %v1080_v0 = vsel %vm652_vm4, 1.0, %v1177_v51  ;;  %v1952_v1 = vadd.f32 %v621_v33, %v1731_v46  ;;  %v558_v53 = vadd.f32 %v1957_v23, %v542_v5  ;;  %v1960_v36 = vmul.f32 0.25, %v714_v9  ;;  %v1970_v46 = vld [vmem:[%s2426_s4] ss:$0 sm:$0xff] }
  0x66   :  { %1096 = vst [vmem:[%s2428_s6 + $0x120] sm:$0xff] %v1080_v0  ;;  %v622_v35 = vadd.f32 %v1248_v10, %v606_v2  ;;  %v559_v25 = vadd.f32 %v1957_v23, %v543_v14  ;;  %v592_v63 = vmul.f32 %v1970_v46, %v1068_v56  ;;  %v716_v34 = vsub.f32 1.0, %v1079_v45  ;;  %v1980_v10 = vld [vmem:[%s2424_s2] ss:$0 sm:$0xff] }
  0x67   :  { %vm653_vm5 = vcmp.gt.f32.partialorder %v1952_v1, 0.5  ;;  %v607_v38 = vadd.f32 %v591_v37, %v558_v53  ;;  %v544_v40 = vmul.f32 %v1980_v10, %v1053_v6  ;;  %v1989_v54 = vmul.f32 0.25, %v715_v21  ;;  %v1072_v37 = vld [vmem:[%s2423_s1 + $0x160] sm:$0xff]  ;;  %v1057_v21 = vld [vmem:[%s2422_s0 + $0x168] sm:$0xff] }
  0x68   :  { %v1081_v24 = vsel %vm653_vm5, 1.0, %v1177_v51  ;;  %v1993_v42 = vadd.f32 %v622_v35, %v1734_v49  ;;  %v608_v32 = vadd.f32 %v592_v63, %v559_v25  ;;  %v717_v19 = vsub.f32 1.0, %v1080_v0  ;;  %v1055_v49 = vld [vmem:[%s2422_s0 + $0x158] sm:$0xff] }
  0x69   :  { %1097 = vst [vmem:[%s2428_s6 + $0x128] sm:$0xff] %v1081_v24  ;;  %v623_v43 = vadd.f32 %v2001_v13, %v607_v38  ;;  %v560_v4 = vadd.f32 %v1957_v23, %v544_v40  ;;  %v593_v48 = vmul.f32 %v1970_v46, %v1069_v29  ;;  %v545_v31 = vmul.f32 %v1980_v10, %v1054_v41  ;;  %v1073_v29 = vld [vmem:[%s2423_s1 + $0x168] sm:$0xff]  ;;  %v1058_v40 = vld [vmem:[%s2422_s0 + $0x170] sm:$0xff] }
  0x6a   :  { %vm654_vm6 = vcmp.gt.f32.partialorder %v1993_v42, 0.5  ;;  %v624_v20 = vadd.f32 %v2001_v13, %v608_v32  ;;  %v594_v47 = vmul.f32 %v1970_v46, %v1070_v7  ;;  %v2019_v58 = vmul.f32 0.25, %v716_v34  ;;  %v1074_v41 = vld [vmem:[%s2423_s1 + $0x170] sm:$0xff] }
  0x6b   :  { %v1082_v61 = vsel %vm654_vm6, 1.0, %v1177_v51  ;;  %v2023_v62 = vadd.f32 %v623_v43, %v1747_v17  ;;  %v609_v55 = vadd.f32 %v593_v48, %v560_v4  ;;  %v718_v3 = vsub.f32 1.0, %v1081_v24 }
  0x6c   :  { %1098 = vst [vmem:[%s2428_s6 + $0x130] sm:$0xff] %v1082_v61  ;;  %v2029_v11 = vadd.f32 %v624_v20, %v1777_v22  ;;  %v561_v9 = vadd.f32 %v1957_v23, %v545_v31  ;;  %v546_v50 = vmul.f32 %v1980_v10, %v1055_v49  ;;  %v595_v17 = vmul.f32 %v1970_v46, %v1071_v12  ;;  %v1059_v20 = vld [vmem:[%s2422_s0 + $0x178] sm:$0xff] }
  0x6d   :  { %vm655_vm7 = vcmp.gt.f32.partialorder %v2023_v62, 0.5  ;;  %v625_v5 = vadd.f32 %v2001_v13, %v609_v55  ;;  %v547_v33 = vmul.f32 %v1980_v10, %v1056_v44  ;;  %v719_v14 = vsub.f32 1.0, %v1082_v61  ;;  %v1075_v12 = vld [vmem:[%s2423_s1 + $0x178] sm:$0xff] }
  0x6e   :  { %v1083_v22 = vsel %vm655_vm7, 1.0, %v1177_v51  ;;  %vm656_vm8 = vcmp.gt.f32.partialorder %v2029_v11, 0.5  ;;  %v610_v56 = vadd.f32 %v594_v47, %v561_v9  ;;  %v2045_v45 = vmul.f32 0.25, %v717_v19 }
  0x6f   :  { %1099 = vst [vmem:[%s2428_s6 + $0x138] sm:$0xff] %v1083_v22  ;;  %v1084_v2 = vsel %vm656_vm8, 1.0, %v1177_v51  ;;  %v2052_v6 = vadd.f32 %v625_v5, %v1815_v57  ;;  %v562_v0 = vadd.f32 %v1957_v23, %v546_v50  ;;  %v2055_v53 = vmul.f32 0.25, %v718_v3 }
  0x70   :  { %1100 = vst [vmem:[%s2428_s6 + $0x140] sm:$0xff] %v1084_v2  ;;  %v626_v35 = vadd.f32 %v2001_v13, %v610_v56  ;;  %v563_v25 = vadd.f32 %v1957_v23, %v547_v33  ;;  %v596_v63 = vmul.f32 %v1970_v46, %v1072_v37  ;;  %v720_v57 = vsub.f32 1.0, %v1083_v22 }
  0x71   :  { %vm657_vm9 = vcmp.gt.f32.partialorder %v2052_v6, 0.5  ;;  %v611_v34 = vadd.f32 %v595_v17, %v562_v0  ;;  %v548_v38 = vmul.f32 %v1980_v10, %v1057_v21  ;;  %v2074_v7 = vmul.f32 0.25, %v719_v14  ;;  %v1108_v14 = vld [vmem:[%s2422_s0 + $0x180] sm:$0xff] }
  0x72   :  { %v1085_v24 = vsel %vm657_vm9, 1.0, %v1177_v51  ;;  %v2078_v32 = vadd.f32 %v626_v35, %v1831_v27  ;;  %v612_v19 = vadd.f32 %v596_v63, %v563_v25  ;;  %v721_v43 = vsub.f32 1.0, %v1084_v2 }
  0x73   :  { %1101 = vst [vmem:[%s2428_s6 + $0x148] sm:$0xff] %v1085_v24  ;;  %v627_v4 = vadd.f32 %v2001_v13, %v611_v34  ;;  %v564_v48 = vadd.f32 %v1957_v23, %v548_v38  ;;  %v597_v49 = vmul.f32 %v1970_v46, %v1073_v29  ;;  %v549_v31 = vmul.f32 %v1980_v10, %v1058_v40  ;;  %v1109_v38 = vld [vmem:[%s2422_s0 + $0x188] sm:$0xff] }
  0x74   :  { %vm658_vm10 = vcmp.gt.f32.partialorder %v2078_v32, 0.5  ;;  %v628_v27 = vadd.f32 %v2001_v13, %v612_v19  ;;  %v598_v47 = vmul.f32 %v1970_v46, %v1074_v41  ;;  %v2096_v44 = vmul.f32 0.25, %v720_v57  ;;  %v1110_v19 = vld [vmem:[%s2422_s0 + $0x190] sm:$0xff] }
  0x75   :  { %v1086_v61 = vsel %vm658_vm10, 1.0, %v1177_v51  ;;  %v2100_v55 = vadd.f32 %v627_v4, %v1833_v59  ;;  %v613_v3 = vadd.f32 %v597_v49, %v564_v48  ;;  %v722_v9 = vsub.f32 1.0, %v1085_v24 }
  0x76   :  { %1102 = vst [vmem:[%s2428_s6 + $0x150] sm:$0xff] %v1086_v61  ;;  %v2106_v50 = vadd.f32 %v628_v27, %v1867_v30  ;;  %v565_v5 = vadd.f32 %v1957_v23, %v549_v31  ;;  %v550_v17 = vmul.f32 %v1980_v10, %v1059_v20  ;;  %v723_v33 = vsub.f32 1.0, %v1086_v61  ;;  %v1124_v30 = vld [vmem:[%s2423_s1 + $0x180] sm:$0xff]  ;;  %v1126_v31 = vld [vmem:[%s2423_s1 + $0x190] sm:$0xff]  ;;  %v1111_v61 = vld [vmem:[%s2422_s0 + $0x198] sm:$0xff] }
  0x77   :  { %vm659_vm11 = vcmp.gt.f32.partialorder %v2100_v55, 0.5  ;;  %v629_v37 = vadd.f32 %v2001_v13, %v613_v3  ;;  %v599_v59 = vmul.f32 %v1970_v46, %v1075_v12  ;;  %v2119_v22 = vmul.f32 0.25, %v721_v43 }
  0x78   :  { %v1087_v56 = vsel %vm659_vm11, 1.0, %v1177_v51  ;;  %vm660_vm12 = vcmp.gt.f32.partialorder %v2106_v50, 0.5  ;;  %v614_v21 = vadd.f32 %v598_v47, %v565_v5  ;;  %v566_v25 = vadd.f32 %v1957_v23, %v550_v17 }
  0x79   :  { %1103 = vst [vmem:[%s2428_s6 + $0x158] sm:$0xff] %v1087_v56  ;;  %v724_v2 = vsub.f32 1.0, %v1087_v56  ;;  %v1088_v0 = vsel %vm660_vm12, 1.0, %v1177_v51  ;;  %v2128_v35 = vadd.f32 %v629_v37, %v1874_v39  ;;  %v2131_v63 = vmul.f32 0.25, %v722_v9  ;;  %v1125_v39 = vld [vmem:[%s2423_s1 + $0x188] sm:$0xff]  ;;  %v1112_v56 = vld [vmem:[%s2422_s0 + $0x1a0] sm:$0xff] }
  0x7a   :  { %1104 = vst [vmem:[%s2428_s6 + $0x160] sm:$0xff] %v1088_v0  ;;  %v630_v29 = vadd.f32 %v2001_v13, %v614_v21  ;;  %v778_v57 = vmul.f32 %v1980_v10, %v1108_v14  ;;  %v827_v34 = vmul.f32 %v1970_v46, %v1124_v30  ;;  %v2145_v40 = vmul.f32 0.25, %v723_v33 }
  0x7b   :  { %vm661_vm13 = vcmp.gt.f32.partialorder %v2128_v35, 0.5  ;;  %v615_v41 = vadd.f32 %v599_v59, %v566_v25  ;;  %v745_v24 = vmul.f32 %v1945_v26, %v1849_v16  ;;  %v725_v43 = vsub.f32 1.0, %v1088_v0  ;;  %v1127_v59 = vld [vmem:[%s2423_s1 + $0x198] sm:$0xff] }
  0x7c   :  { %v1089_v4 = vsel %vm661_vm13, 1.0, %v1177_v51  ;;  %v2155_v48 = vadd.f32 %v630_v29, %v1894_v52  ;;  %v794_v49 = vadd.f32 %v1957_v23, %v778_v57  ;;  %v2158_v20 = vmul.f32 0.25, %v724_v2 }
  0x7d   :  { %1105 = vst [vmem:[%s2428_s6 + $0x168] sm:$0xff] %v1089_v4  ;;  %v631_v16 = vadd.f32 %v2001_v13, %v615_v41  ;;  %v779_v26 = vmul.f32 %v1980_v10, %v1109_v38  ;;  %v828_v27 = vmul.f32 %v1970_v46, %v1125_v39  ;;  %v746_v47 = vmul.f32 %v1960_v36, %v1871_v28  ;;  %v1128_v39 = vld [vmem:[%s2423_s1 + $0x1a0] sm:$0xff] }
  0x7e   :  { %vm662_vm14 = vcmp.gt.f32.partialorder %v2155_v48, 0.5  ;;  %v843_v52 = vadd.f32 %v827_v34, %v794_v49  ;;  %v780_v12 = vmul.f32 %v1980_v10, %v1110_v19  ;;  %v726_v3 = vsub.f32 1.0, %v1089_v4  ;;  %v1129_v19 = vld [vmem:[%s2423_s1 + $0x1a8] sm:$0xff] }
  0x7f   :  { %v1090_v9 = vsel %vm662_vm14, 1.0, %v1177_v51  ;;  %v2178_v5 = vadd.f32 %v631_v16, %v1919_v18  ;;  %v795_v17 = vadd.f32 %v1957_v23, %v779_v26  ;;  %v2181_v33 = vmul.f32 0.25, %v725_v43 }
  0x80   :  { %1106 = vst [vmem:[%s2428_s6 + $0x170] sm:$0xff] %v1090_v9  ;;  %v859_v28 = vadd.f32 %v2001_v13, %v843_v52  ;;  %v796_v36 = vadd.f32 %v1957_v23, %v780_v12  ;;  %v829_v37 = vmul.f32 %v1970_v46, %v1126_v31  ;;  %v727_v18 = vsub.f32 1.0, %v1090_v9  ;;  %v1114_v31 = vld [vmem:[%s2422_s0 + $0x1b0] sm:$0xff] }
  0x81   :  { %vm663_vm15 = vcmp.gt.f32.partialorder %v2178_v5, 0.5  ;;  %v844_v14 = vadd.f32 %v828_v27, %v795_v17  ;;  %v781_v30 = vmul.f32 %v1980_v10, %v1111_v61  ;;  %v747_v0 = vmul.f32 %v1989_v54, %v1898_v15  ;;  %v1130_v61 = vld [vmem:[%s2423_s1 + $0x1b0] sm:$0xff]  ;;  %v1131_v17 = vld [vmem:[%s2423_s1 + $0x1b8] sm:$0xff] }
  0x82   :  { %v2198_v21 = vsel %vm663_vm15, 1.0, %v1177_v51  ;;  %v875_v2 = vadd.f32 %v859_v28, %v745_v24  ;;  %v845_v25 = vadd.f32 %v829_v37, %v796_v36  ;;  %v2202_v29 = vmul.f32 0.25, %v726_v3  ;;  %v1113_v24 = vld [vmem:[%s2422_s0 + $0x1a8] sm:$0xff] }
  0x83   :  { %1107 = vst [vmem:[%s2428_s6 + $0x178] sm:$0xff] %v2198_v21  ;;  %v860_v57 = vadd.f32 %v2001_v13, %v844_v14  ;;  %v797_v34 = vadd.f32 %v1957_v23, %v781_v30  ;;  %v830_v38 = vmul.f32 %v1970_v46, %v1127_v59  ;;  %v748_v54 = vmul.f32 %v2019_v58, %v1923_v8  ;;  %v1116_v30 = vld [vmem:[%s2422_s0 + $0x1c0] sm:$0xff] }
  0x84   :  { %vm891_vm0 = vcmp.gt.f32.partialorder %v875_v2, 0.5  ;;  %v861_v15 = vadd.f32 %v2001_v13, %v845_v25  ;;  %v782_v41 = vmul.f32 %v1980_v10, %v1112_v56  ;;  %v2224_v43 = vmul.f32 0.25, %v727_v18  ;;  %v1132_v56 = vld [vmem:[%s2423_s1 + $0x1c0] sm:$0xff] }
  0x85   :  { %v1140_v4 = vsel %vm891_vm0, 1.0, %v1177_v51  ;;  %v876_v49 = vadd.f32 %v860_v57, %v746_v47  ;;  %v846_v16 = vadd.f32 %v830_v38, %v797_v34  ;;  %v749_v58 = vmul.f32 %v2045_v45, %v1929_v60  ;;  %v1115_v60 = vld [vmem:[%s2422_s0 + $0x1b8] sm:$0xff] }
  0x86   :  { %1156 = vst [vmem:[%s2428_s6 + $0x180] sm:$0xff] %v1140_v4  ;;  %v877_v8 = vadd.f32 %v861_v15, %v747_v0  ;;  %v798_v26 = vadd.f32 %v1957_v23, %v782_v41  ;;  %v831_v27 = vmul.f32 %v1970_v46, %v1128_v39  ;;  %v783_v47 = vmul.f32 %v1980_v10, %v1113_v24  ;;  %v1133_v24 = vld [vmem:[%s2423_s1 + $0x1c8] sm:$0xff]  ;;  %v1118_v4 = vld [vmem:[%s2422_s0 + $0x1d0] sm:$0xff] }
  0x87   :  { %vm892_vm1 = vcmp.gt.f32.partialorder %v876_v49, 0.5  ;;  %v862_v52 = vadd.f32 %v2001_v13, %v846_v16  ;;  %v832_v12 = vmul.f32 %v1970_v46, %v1129_v19  ;;  %v750_v9 = vmul.f32 %v2055_v53, %v1952_v1 }
  0x88   :  { %v1141_v45 = vsel %vm892_vm1, 1.0, %v1177_v51  ;;  %vm893_vm2 = vcmp.gt.f32.partialorder %v877_v8, 0.5  ;;  %v847_v3 = vadd.f32 %v831_v27, %v798_v26  ;;  %v799_v37 = vadd.f32 %v1957_v23, %v783_v47  ;;  %v1134_v26 = vld [vmem:[%s2423_s1 + $0x1d0] sm:$0xff] }
  0x89   :  { %1157 = vst [vmem:[%s2428_s6 + $0x188] sm:$0xff] %v1141_v45  ;;  %v1142_v28 = vsel %vm893_vm2, 1.0, %v1177_v51  ;;  %v878_v36 = vadd.f32 %v862_v52, %v748_v54  ;;  %v784_v59 = vmul.f32 %v1980_v10, %v1114_v31  ;;  %v751_v53 = vmul.f32 %v2074_v7, %v1993_v42  ;;  %v1117_v42 = vld [vmem:[%s2422_s0 + $0x1c8] sm:$0xff] }
  0x8a   :  { %1158 = vst [vmem:[%s2428_s6 + $0x190] sm:$0xff] %v1142_v28  ;;  %v863_v1 = vadd.f32 %v2001_v13, %v847_v3  ;;  %v833_v18 = vmul.f32 %v1970_v46, %v1130_v61  ;;  %v785_v14 = vmul.f32 %v1980_v10, %v1115_v60  ;;  %v848_v2 = vadd.f32 %v832_v12, %v799_v37  ;;  %v1119_v61 = vld [vmem:[%s2422_s0 + $0x1d8] sm:$0xff] }
  0x8b   :  { %vm894_vm3 = vcmp.gt.f32.partialorder %v878_v36, 0.5  ;;  %v800_v0 = vadd.f32 %v1957_v23, %v784_v59  ;;  %v834_v25 = vmul.f32 %v1970_v46, %v1131_v17  ;;  %v752_v34 = vmul.f32 %v2096_v44, %v2023_v62  ;;  %v1120_v36 = vld [vmem:[%s2422_s0 + $0x1e0] sm:$0xff] }
  0x8c   :  { %v1143_v7 = vsel %vm894_vm3, 1.0, %v1177_v51  ;;  %v879_v57 = vadd.f32 %v863_v1, %v749_v58  ;;  %v801_v38 = vadd.f32 %v1957_v23, %v785_v14  ;;  %v864_v39 = vadd.f32 %v2001_v13, %v848_v2 }
  0x8d   :  { %1159 = vst [vmem:[%s2428_s6 + $0x198] sm:$0xff] %v1143_v7  ;;  %v849_v15 = vadd.f32 %v833_v18, %v800_v0  ;;  %v786_v54 = vmul.f32 %v1980_v10, %v1116_v30  ;;  %v835_v41 = vmul.f32 %v1970_v46, %v1132_v56  ;;  %v753_v62 = vmul.f32 %v2119_v22, %v2029_v11 }
  0x8e   :  { %vm895_vm4 = vcmp.gt.f32.partialorder %v879_v57, 0.5  ;;  %v850_v19 = vadd.f32 %v834_v25, %v801_v38  ;;  %v787_v44 = vmul.f32 %v1980_v10, %v1117_v42  ;;  %v880_v16 = vadd.f32 %v864_v39, %v750_v9  ;;  %v1121_v25 = vld [vmem:[%s2422_s0 + $0x1e8] sm:$0xff] }
  0x8f   :  { %v1144_v49 = vsel %vm895_vm4, 1.0, %v1177_v51  ;;  %v865_v8 = vadd.f32 %v2001_v13, %v849_v15  ;;  %v802_v58 = vadd.f32 %v1957_v23, %v786_v54  ;;  %v754_v22 = vmul.f32 %v2131_v63, %v2052_v6  ;;  %v1135_v6 = vld [vmem:[%s2423_s1 + $0x1d8] sm:$0xff]  ;;  %v1137_v42 = vld [vmem:[%s2423_s1 + $0x1e8] sm:$0xff]  ;;  %v1138_v54 = vld [vmem:[%s2423_s1 + $0x1f0] sm:$0xff] }
  0x90   :  { %1160 = vst [vmem:[%s2428_s6 + $0x1a0] sm:$0xff] %v1144_v49  ;;  %v866_v11 = vadd.f32 %v2001_v13, %v850_v19  ;;  %v803_v27 = vadd.f32 %v1957_v23, %v787_v44  ;;  %v836_v31 = vmul.f32 %v1970_v46, %v1133_v24  ;;  %vm896_vm5 = vcmp.gt.f32.partialorder %v880_v16, 0.5  ;;  %v1123_v49 = vld [vmem:[%s2422_s0 + $0x1f8] sm:$0xff] }
  0x91   :  { %v881_v52 = vadd.f32 %v865_v8, %v751_v53  ;;  %v851_v47 = vadd.f32 %v835_v41, %v802_v58  ;;  %v788_v12 = vmul.f32 %v1980_v10, %v1118_v4  ;;  %v1145_v60 = vsel %vm896_vm5, 1.0, %v1177_v51  ;;  %v1136_v53 = vld [vmem:[%s2423_s1 + $0x1e0] sm:$0xff]  ;;  %v1139_v16 = vld [vmem:[%s2423_s1 + $0x1f8] sm:$0xff] }
  0x92   :  { %v882_v45 = vadd.f32 %v866_v11, %v752_v34  ;;  %v852_v3 = vadd.f32 %v836_v31, %v803_v27  ;;  %v837_v9 = vmul.f32 %v1970_v46, %v1134_v26  ;;  %1161 = vst [vmem:[%s2428_s6 + $0x1a8] sm:$0xff] %v1145_v60  ;;  %v755_v17 = vmul.f32 %v2145_v40, %v2078_v32  ;;  %v1122_v34 = vld [vmem:[%s2422_s0 + $0x1f0] sm:$0xff] }
  0x93   :  { %vm897_vm6 = vcmp.gt.f32.partialorder %v881_v52, 0.5  ;;  %v867_v63 = vadd.f32 %v2001_v13, %v851_v47  ;;  %v804_v28 = vadd.f32 %v1957_v23, %v788_v12  ;;  %v789_v1 = vmul.f32 %v1980_v10, %v1119_v61 }
  0x94   :  { %v1146_v37 = vsel %vm897_vm6, 1.0, %v1177_v51  ;;  %vm898_vm7 = vcmp.gt.f32.partialorder %v882_v45, 0.5  ;;  %v868_v59 = vadd.f32 %v2001_v13, %v852_v3  ;;  %v838_v14 = vmul.f32 %v1970_v46, %v1135_v6 }
  0x95   :  { %1162 = vst [vmem:[%s2428_s6 + $0x1b0] sm:$0xff] %v1146_v37  ;;  %v1147_v32 = vsel %vm898_vm7, 1.0, %v1177_v51  ;;  %v883_v40 = vadd.f32 %v867_v63, %v753_v62  ;;  %v853_v18 = vadd.f32 %v837_v9, %v804_v28  ;;  %v728_v30 = vsub.f32 1.0, %v2198_v21 }
  0x96   :  { %1163 = vst [vmem:[%s2428_s6 + $0x1b8] sm:$0xff] %v1147_v32  ;;  %v884_v56 = vadd.f32 %v868_v59, %v754_v22  ;;  %v805_v2 = vadd.f32 %v1957_v23, %v789_v1  ;;  %v790_v0 = vmul.f32 %v1980_v10, %v1120_v36  ;;  %v756_v7 = vmul.f32 %v2158_v20, %v2100_v55 }
  0x97   :  { %vm899_vm8 = vcmp.gt.f32.partialorder %v883_v40, 0.5  ;;  %v869_v21 = vadd.f32 %v2001_v13, %v853_v18  ;;  %v839_v57 = vmul.f32 %v1970_v46, %v1136_v53  ;;  %v791_v41 = vmul.f32 %v1980_v10, %v1121_v25 }
  0x98   :  { %v1148_v38 = vsel %vm899_vm8, 1.0, %v1177_v51  ;;  %vm900_vm9 = vcmp.gt.f32.partialorder %v884_v56, 0.5  ;;  %v854_v39 = vadd.f32 %v838_v14, %v805_v2  ;;  %v806_v15 = vadd.f32 %v1957_v23, %v790_v0 }
  0x99   :  { %1164 = vst [vmem:[%s2428_s6 + $0x1c0] sm:$0xff] %v1148_v38  ;;  %v1149_v55 = vsel %vm900_vm9, 1.0, %v1177_v51  ;;  %v885_v20 = vadd.f32 %v869_v21, %v755_v17  ;;  %v840_v24 = vmul.f32 %v1970_v46, %v1137_v42  ;;  %v757_v62 = vmul.f32 %v2181_v33, %v2106_v50 }
  0x9a   :  { %1165 = vst [vmem:[%s2428_s6 + $0x1c8] sm:$0xff] %v1149_v55  ;;  %v870_v19 = vadd.f32 %v2001_v13, %v854_v39  ;;  %v855_v44 = vadd.f32 %v839_v57, %v806_v15  ;;  %v792_v4 = vmul.f32 %v1980_v10, %v1122_v34  ;;  %v744_v8 = vmul.f32 0.25, %v728_v30 }
  0x9b   :  { %vm901_vm10 = vcmp.gt.f32.partialorder %v885_v20, 0.5  ;;  %v807_v58 = vadd.f32 %v1957_v23, %v791_v41  ;;  %v841_v26 = vmul.f32 %v1970_v46, %v1138_v54  ;;  %v758_v27 = vmul.f32 %v2202_v29, %v2128_v35 }
  0x9c   :  { %v1150_v11 = vsel %vm901_vm10, 1.0, %v1177_v51  ;;  %v886_v50 = vadd.f32 %v870_v19, %v756_v7  ;;  %v871_v33 = vadd.f32 %v2001_v13, %v855_v44  ;;  %v808_v22 = vadd.f32 %v1957_v23, %v792_v4 }
  0x9d   :  { %1166 = vst [vmem:[%s2428_s6 + $0x1d0] sm:$0xff] %v1150_v11  ;;  %v856_v31 = vadd.f32 %v840_v24, %v807_v58  ;;  %v793_v52 = vmul.f32 %v1980_v10, %v1123_v49  ;;  %v842_v47 = vmul.f32 %v1970_v46, %v1139_v16  ;;  %v759_v61 = vmul.f32 %v2224_v43, %v2155_v48 }
  0x9e   :  { %vm902_vm11 = vcmp.gt.f32.partialorder %v886_v50, 0.5  ;;  %v887_v12 = vadd.f32 %v871_v33, %v757_v62  ;;  %v857_v60 = vadd.f32 %v841_v26, %v808_v22  ;;  %v760_v29 = vmul.f32 %v744_v8, %v2178_v5 }
  0x9f   :  { %v1151_v45 = vsel %vm902_vm11, 1.0, %v1177_v51  ;;  %v872_v3 = vadd.f32 %v2001_v13, %v856_v31  ;;  %v809_v9 = vadd.f32 %v1957_v23, %v793_v52 }
  0xa0   :  { %1167 = vst [vmem:[%s2428_s6 + $0x1d8] sm:$0xff] %v1151_v45  ;;  %vm903_vm12 = vcmp.gt.f32.partialorder %v887_v12, 0.5  ;;  %v873_v10 = vadd.f32 %v2001_v13, %v857_v60 }
  0xa1   :  { %v1152_v46 = vsel %vm903_vm12, 1.0, %v1177_v51  ;;  %v888_v35 = vadd.f32 %v872_v3, %v758_v27  ;;  %v858_v48 = vadd.f32 %v842_v47, %v809_v9 }
  0xa2   :  { %1168 = vst [vmem:[%s2428_s6 + $0x1e0] sm:$0xff] %v1152_v46  ;;  %v889_v43 = vadd.f32 %v873_v10, %v759_v61 }
  0xa3   :  { %vm904_vm13 = vcmp.gt.f32.partialorder %v888_v35, 0.5  ;;  %v874_v23 = vadd.f32 %v2001_v13, %v858_v48 }
  0xa4   :  { %v1153_v6 = vsel %vm904_vm13, 1.0, %v1177_v51  ;;  %vm905_vm14 = vcmp.gt.f32.partialorder %v889_v43, 0.5 }
  0xa5   :  { %1169 = vst [vmem:[%s2428_s6 + $0x1e8] sm:$0xff] %v1153_v6  ;;  %v1154_v63 = vsel %vm905_vm14, 1.0, %v1177_v51  ;;  %v890_v17 = vadd.f32 %v874_v23, %v760_v29 }
  0xa6   :  { %1170 = vst [vmem:[%s2428_s6 + $0x1f0] sm:$0xff] %v1154_v63 }
  0xa7   :  { %vm906_vm15 = vcmp.gt.f32.partialorder %v890_v17, 0.5 }
  0xa8   :  { %v1155_v5 = vsel %vm906_vm15, 1.0, %v1177_v51 }
  0xa9   :  { %1171 = vst [vmem:[%s2428_s6 + $0x1f8] sm:$0xff] %v1155_v5 }

</bundles_post_ra>
